<compile_context>
chip_gen: v7x
topology: tpu7x:2x2x1
jax: 0.10.0
libtpu: 0.0.40
codegen_flags: <defaults>
</compile_context>

<pallas_src>
import numpy as np
import jax
import jax.numpy as jnp
from jax.experimental import pallas as pl
from jax.experimental.pallas import tpu as pltpu

# Full-precision f32 matmuls (kernel + reference) so layout bugs can't hide
# behind bf16-pass matmul noise.
jax.config.update("jax_default_matmul_precision", "highest")

# ----------------------- small synthetic FLAME config -----------------------
B = 2                    # batch
N_SHAPE = 8              # shape betas
N_EXP = 8                # expression betas
N_BETAS = N_SHAPE + N_EXP
V = 256                  # vertices (multiple of 128 -> lane-dense)
V3 = V * 3
J = 5                    # joints (global, neck, jaw, eyeL, eyeR)
P_POSE = (J - 1) * 9     # pose-blendshape basis size
N_BP = N_BETAS + P_POSE  # merged blendshape basis size (52)
N_FACES = 64
N_LMK = 16
PARENTS = np.array([-1, 0, 1, 1, 1], dtype=np.int64)


# ------------------------------ plain-JAX glue -------------------------------
def batch_rodrigues(rot_vecs):
    """(N, 3) axis-angle -> (N, 3, 3) rotation matrices."""
    angle = jnp.linalg.norm(rot_vecs + 1e-8, axis=1, keepdims=True)        # (N,1)
    rot_dir = rot_vecs / angle
    cos = jnp.cos(angle)[:, None, :]                                       # (N,1,1)
    sin = jnp.sin(angle)[:, None, :]
    rx, ry, rz = rot_dir[:, 0:1], rot_dir[:, 1:2], rot_dir[:, 2:3]
    zeros = jnp.zeros_like(rx)
    K = jnp.concatenate([zeros, -rz, ry, rz, zeros, -rx, -ry, rx, zeros],
                        axis=1).reshape(-1, 3, 3)
    ident = jnp.eye(3, dtype=rot_vecs.dtype)[None]
    return ident + sin * K + (1.0 - cos) * jnp.matmul(K, K)


def _transform_mat(R, t):
    """R (N,3,3), t (N,3,1) -> (N,4,4)."""
    Rt = jnp.concatenate([R, t], axis=2)
    bottom = jnp.broadcast_to(jnp.array([0., 0., 0., 1.], dtype=R.dtype),
                              (R.shape[0], 1, 4))
    return jnp.concatenate([Rt, bottom], axis=1)


def batch_rigid_transform(rot_mats, joints, parents):
    # TODO(synk): 5-joint sequential kinematic chain stays in plain JAX; it is
    # a handful of tiny 4x4 matmuls with a serial dependency, no kernel benefit.
    bs, jn = joints.shape[:2]
    joints = joints[..., None]                                             # (B,J,3,1)
    parents = np.asarray(parents)
    rel_joints = joints.at[:, 1:].add(-joints[:, parents[1:]])
    transforms_mat = _transform_mat(rot_mats.reshape(-1, 3, 3),
                                    rel_joints.reshape(-1, 3, 1)).reshape(bs, jn, 4, 4)
    chain = [transforms_mat[:, 0]]
    for i in range(1, jn):
        chain.append(jnp.matmul(chain[int(parents[i])], transforms_mat[:, i]))
    transforms = jnp.stack(chain, axis=1)                                  # (B,J,4,4)
    posed_joints = transforms[:, :, :3, 3]
    joints_homogen = jnp.concatenate(
        [joints, jnp.zeros((bs, jn, 1, 1), joints.dtype)], axis=2)         # (B,J,4,1)
    rel = transforms - jnp.pad(jnp.matmul(transforms, joints_homogen),
                               ((0, 0), (0, 0), (0, 0), (3, 0)))
    return posed_joints, rel


# ------------------------------- Pallas kernel --------------------------------
def _flame_kernel(bp_ref, vtemp_ref, dirs_ref, w_ref, a_ref, sel_ref,
                  verts_ref, lmk_ref):
    """Fused blendshapes + LBS skinning + landmark selection (single step).

    bp_ref:    (B, NB+P)   [betas | pose_feature]
    vtemp_ref: (1, 3V)     template, xyz-major flatten (col = k*V + v)
    dirs_ref:  (NB+P, 3V)  [shapedirs ; posedirs], xyz-major flatten
    w_ref:     (J, V)      LBS weights, transposed
    a_ref:     (B*12, J)   rigid transforms, row = b*12 + 4*k + c (bottom row dropped)
    sel_ref:   (V, L)      barycentric landmark selection, transposed
    verts_ref: (B, 3, V)   output vertices, xyz on the sublane axis (lane-dense)
    lmk_ref:   (B, 3, L)   output landmarks
    """
    nb, _, nv = verts_ref.shape
    # Merged shape+pose blendshapes: one K=52 matmul plus the template add.
    v_posed = vtemp_ref[...] + jnp.dot(bp_ref[...], dirs_ref[...],
                                       preferred_element_type=jnp.float32)  # (B, 3V)
    # All per-batch LBS transforms in one matmul (rows 12..15 never needed).
    T = jnp.dot(a_ref[...], w_ref[...],
                preferred_element_type=jnp.float32)                         # (B*12, V)
    sel = sel_ref[...]                                                      # (V, L)
    for b in range(nb):                                                     # unrolled (B=2)
        vx = v_posed[b:b + 1, 0 * nv:1 * nv]
        vy = v_posed[b:b + 1, 1 * nv:2 * nv]
        vz = v_posed[b:b + 1, 2 * nv:3 * nv]
        rows = []
        for k in range(3):                                                  # unrolled
            r = b * 12 + 4 * k
            rows.append(T[r + 0:r + 1, :] * vx + T[r + 1:r + 2, :] * vy
                        + T[r + 2:r + 3, :] * vz + T[r + 3:r + 4, :])
        vb = jnp.concatenate(rows, axis=0)                                  # (3, V)
        verts_ref[b, :, :] = vb                                             # single store
        # Landmarks while verts are still VMEM-resident.
        lmk_ref[b, :, :] = jnp.dot(vb, sel, preferred_element_type=jnp.float32)


def flame_fused_pallas(bp, vtemp_x, dirs_x, lbs_w_t, a_rows, lmk_sel_t):
    flops = int(2 * B * N_BP * V3          # blendshapes
                + 2 * B * 12 * J * V       # LBS transforms
                + 7 * B * 3 * V            # apply transforms
                + 2 * B * 3 * V * N_LMK)   # landmarks
    bytes_accessed = int(4 * (bp.size + vtemp_x.size + dirs_x.size + lbs_w_t.size
                              + a_rows.size + lmk_sel_t.size
                              + B * 3 * V + B * 3 * N_LMK))
    vspec = pl.BlockSpec(memory_space=pltpu.MemorySpace.VMEM)
    return pl.pallas_call(
        _flame_kernel,
        out_shape=(jax.ShapeDtypeStruct((B, 3, V), jnp.float32),
                   jax.ShapeDtypeStruct((B, 3, N_LMK), jnp.float32)),
        in_specs=[vspec] * 6,
        out_specs=(vspec, vspec),
        cost_estimate=pl.CostEstimate(flops=flops, transcendentals=0,
                                      bytes_accessed=bytes_accessed),
    )(bp, vtemp_x, dirs_x, lbs_w_t, a_rows, lmk_sel_t)


# ------------------------------ FLAME forward --------------------------------
def flame_forward_pallas(shape_params, expression_params, pose_params, prm):
    batch_size = expression_params.shape[0]
    betas = jnp.concatenate(
        [jnp.tile(shape_params, (batch_size, 1)), expression_params], axis=1)
    rot_mats = batch_rodrigues(pose_params.reshape(-1, 3)).reshape(batch_size, J, 3, 3)
    pose_feature = (rot_mats[:, 1:] - jnp.eye(3, dtype=jnp.float32)
                    ).reshape(batch_size, P_POSE)
    bp = jnp.concatenate([betas, pose_feature], axis=1)                    # (B, 52)

    # Joints directly from betas via the J_regressor-projected shape basis
    # (tiny (B,16)@(16,J*3) work, stays in plain JAX as pre-staging).
    joints = prm["jtemp"][None] + jnp.einsum('bl,ljk->bjk', betas, prm["jsdirs"])

    _, A = batch_rigid_transform(rot_mats, joints, PARENTS)                # (B,J,4,4)
    # Keep only rows k=0..2 (bottom row never read); row index = b*12 + 4*k + c.
    a_rows = jnp.transpose(A[:, :, :3, :], (0, 2, 3, 1)).reshape(batch_size * 12, J)

    verts3, lmk3 = flame_fused_pallas(bp, prm["vtemp_x"], prm["dirs_x"],
                                      prm["lbs_w_t"], a_rows, prm["lmk_sel_t"])
    verts = jnp.transpose(verts3, (0, 2, 1))                               # (B,V,3)
    landmarks = jnp.transpose(lmk3, (0, 2, 1))                             # (B,L,3)
    return verts, landmarks


# --------------------------- pure-JAX reference -------------------------------
def flame_forward_reference(shape_params, expression_params, pose_params, prm):
    batch_size = expression_params.shape[0]
    betas = jnp.concatenate(
        [jnp.tile(shape_params, (batch_size, 1)), expression_params], axis=1)
    v_shaped = prm["v_template"][None] + jnp.einsum(
        'bl,vkl->bvk', betas, prm["shapedirs"])
    joints = jnp.einsum('jv,bvk->bjk', prm["J_regressor"], v_shaped)
    rot_mats = batch_rodrigues(pose_params.reshape(-1, 3)).reshape(batch_size, J, 3, 3)
    pose_feature = (rot_mats[:, 1:] - jnp.eye(3)).reshape(batch_size, -1)
    pose_offsets = jnp.einsum('bp,vkp->bvk', pose_feature, prm["posedirs_raw"])
    v_posed = v_shaped + pose_offsets
    _, A = batch_rigid_transform(rot_mats, joints, PARENTS)
    T = jnp.einsum('vj,bjkc->bvkc', prm["lbs_weights"], A)
    vh = jnp.concatenate([v_posed, jnp.ones((batch_size, V, 1))], axis=2)
    verts = jnp.einsum('bvkc,bvc->bvk', T, vh)[:, :, :3]
    lmk_vidx = np.asarray(prm["faces"])[np.asarray(prm["lmk_faces_idx"])]
    lmk_verts = verts[:, lmk_vidx]                                         # (B,L,3,3)
    landmarks = jnp.einsum('blfi,lf->bli', lmk_verts, prm["lmk_bary"])
    return verts, landmarks


# --------------------------- deterministic params ----------------------------
def build_params(key):
    ks = jax.random.split(key, 8)
    v_template = jax.random.normal(ks[0], (V, 3), jnp.float32) * 0.1
    shapedirs_full = jax.random.normal(ks[1], (V, 3, 400), jnp.float32) * 0.01
    shapedirs = jnp.concatenate(
        [shapedirs_full[:, :, :N_SHAPE], shapedirs_full[:, :, 300:300 + N_EXP]],
        axis=2)                                                            # (V,3,NB)
    posedirs_raw = jax.random.normal(ks[2], (V, 3, P_POSE), jnp.float32) * 0.01
    jr = jax.random.uniform(ks[3], (J, V), jnp.float32)
    J_regressor = jr / jnp.sum(jr, axis=1, keepdims=True)                  # (J, V)
    lw = jax.random.uniform(ks[4], (V, J), jnp.float32)
    lbs_weights = lw / jnp.sum(lw, axis=1, keepdims=True)                  # (V, J)
    faces = jax.random.randint(ks[5], (N_FACES, 3), 0, V)
    lmk_faces_idx = jax.random.randint(ks[6], (N_LMK,), 0, N_FACES)
    bc = jax.random.uniform(ks[7], (N_LMK, 3), jnp.float32)
    lmk_bary = bc / jnp.sum(bc, axis=1, keepdims=True)

    # --- kernel-friendly layouts (xyz-major: flat column index = k*V + v) ---
    vtemp_x = jnp.transpose(v_template, (1, 0)).reshape(1, 3 * V)          # (1, 3V)
    sdirs_x = jnp.transpose(shapedirs, (2, 1, 0)).reshape(N_BETAS, 3 * V)  # (NB, 3V)
    pdirs_x = jnp.transpose(posedirs_raw, (2, 1, 0)).reshape(P_POSE, 3 * V)
    dirs_x = jnp.concatenate([sdirs_x, pdirs_x], axis=0)                   # (52, 3V)

    # Joint regressor pre-folded into the shape basis: joints = jtemp + betas @ jsdirs
    jtemp = jnp.einsum('jv,vk->jk', J_regressor, v_template)               # (J, 3)
    jsdirs = jnp.einsum('jv,vkl->ljk', J_regressor, shapedirs)             # (NB, J, 3)

    lbs_w_t = jnp.transpose(lbs_weights, (1, 0))                           # (J, V)

    # Barycentric landmark selection folded into one (V, L) matrix.
    lmk_vidx = np.asarray(faces)[np.asarray(lmk_faces_idx)]                # (L, 3)
    sel = np.zeros((N_LMK, V), np.float32)
    bary_np = np.asarray(lmk_bary)
    for l in range(N_LMK):
        for f in range(3):
            sel[l, lmk_vidx[l, f]] += bary_np[l, f]
    lmk_sel_t = jnp.asarray(sel.T)                                         # (V, L)

    return dict(
        v_template=v_template, shapedirs=shapedirs, posedirs_raw=posedirs_raw,
        J_regressor=J_regressor, lbs_weights=lbs_weights, faces=faces,
        lmk_faces_idx=lmk_faces_idx, lmk_bary=lmk_bary,
        vtemp_x=vtemp_x, dirs_x=dirs_x, jtemp=jtemp, jsdirs=jsdirs,
        lbs_w_t=lbs_w_t, lmk_sel_t=lmk_sel_t,
    )


if __name__ == "__main__":
    key = jax.random.PRNGKey(0)
    kp, k1, k2, k3 = jax.random.split(key, 4)
    prm = build_params(kp)
    shape_params = jax.random.normal(k1, (1, N_SHAPE), jnp.float32)
    expression_params = jax.random.normal(k2, (B, N_EXP), jnp.float32)
    pose_params = jax.random.normal(k3, (B, 3 * J), jnp.float32) * 0.3

    verts, landmarks = flame_forward_pallas(
        shape_params, expression_params, pose_params, prm)
    jax.block_until_ready((verts, landmarks))

    verts_ref, lmk_ref = flame_forward_reference(
        shape_params, expression_params, pose_params, prm)
    assert verts.shape == (B, V, 3) and landmarks.shape == (B, N_LMK, 3)
    assert np.allclose(np.asarray(verts), np.asarray(verts_ref),
                       atol=1e-4, rtol=1e-4)
    assert np.allclose(np.asarray(landmarks), np.asarray(lmk_ref),
                       atol=1e-4, rtol=1e-4)
    print("KERNEL_OK")
</pallas_src>

<mosaic_0001>
module attributes {stable_mosaic.version = 11 : i64} {
  func.func @_flame_kernel(%arg0: memref<2x52xf32, #tpu.memory_space<vmem>>, %arg1: memref<1x768xf32, #tpu.memory_space<vmem>>, %arg2: memref<52x768xf32, #tpu.memory_space<vmem>>, %arg3: memref<5x256xf32, #tpu.memory_space<vmem>>, %arg4: memref<24x5xf32, #tpu.memory_space<vmem>>, %arg5: memref<256x16xf32, #tpu.memory_space<vmem>>, %arg6: memref<2x3x256xf32, #tpu.memory_space<vmem>>, %arg7: memref<2x3x16xf32, #tpu.memory_space<vmem>>) attributes {dimension_semantics = [], scalar_prefetch = 0 : i64, scratch_operands = 0 : i64, tpu.core_type = #tpu.core_type<tc>} {
    %c0 = arith.constant 0 : index
    %c0_0 = arith.constant 0 : index
    %0 = vector.load %arg1[%c0, %c0_0] : memref<1x768xf32, #tpu.memory_space<vmem>>, vector<1x768xf32>
    %c0_1 = arith.constant 0 : index
    %c0_2 = arith.constant 0 : index
    %1 = vector.load %arg0[%c0_1, %c0_2] : memref<2x52xf32, #tpu.memory_space<vmem>>, vector<2x52xf32>
    %c0_3 = arith.constant 0 : index
    %c0_4 = arith.constant 0 : index
    %2 = vector.load %arg2[%c0_3, %c0_4] : memref<52x768xf32, #tpu.memory_space<vmem>>, vector<52x768xf32>
    %cst = arith.constant dense<0.000000e+00> : vector<2x768xf32>
    %3 = tpu.matmul %1, %2, %cst {dimension_numbers = #tpu.dot_dimension_numbers<[1], [0], [0], [1], [0, 0, 1, 1], [], []>, precision = #tpu.contract_precision<fp32>} : vector<2x52xf32>, vector<52x768xf32>, vector<2x768xf32> -> vector<2x768xf32>
    %4 = vector.broadcast %0 : vector<1x768xf32> to vector<2x768xf32>
    %5 = arith.addf %4, %3 : vector<2x768xf32>
    %c0_5 = arith.constant 0 : index
    %c0_6 = arith.constant 0 : index
    %6 = vector.load %arg4[%c0_5, %c0_6] : memref<24x5xf32, #tpu.memory_space<vmem>>, vector<24x5xf32>
    %c0_7 = arith.constant 0 : index
    %c0_8 = arith.constant 0 : index
    %7 = vector.load %arg3[%c0_7, %c0_8] : memref<5x256xf32, #tpu.memory_space<vmem>>, vector<5x256xf32>
    %cst_9 = arith.constant dense<0.000000e+00> : vector<24x256xf32>
    %8 = tpu.matmul %6, %7, %cst_9 {dimension_numbers = #tpu.dot_dimension_numbers<[1], [0], [0], [1], [0, 0, 1, 1], [], []>, precision = #tpu.contract_precision<fp32>} : vector<24x5xf32>, vector<5x256xf32>, vector<24x256xf32> -> vector<24x256xf32>
    %c0_10 = arith.constant 0 : index
    %c0_11 = arith.constant 0 : index
    %9 = vector.load %arg5[%c0_10, %c0_11] : memref<256x16xf32, #tpu.memory_space<vmem>>, vector<256x16xf32>
    %10 = vector.extract_strided_slice %5 {offsets = [0, 0], sizes = [1, 256], strides = [1, 1]} : vector<2x768xf32> to vector<1x256xf32>
    %11 = vector.extract_strided_slice %5 {offsets = [0, 256], sizes = [1, 256], strides = [1, 1]} : vector<2x768xf32> to vector<1x256xf32>
    %12 = vector.extract_strided_slice %5 {offsets = [0, 512], sizes = [1, 256], strides = [1, 1]} : vector<2x768xf32> to vector<1x256xf32>
    %13 = vector.extract_strided_slice %8 {offsets = [0, 0], sizes = [1, 256], strides = [1, 1]} : vector<24x256xf32> to vector<1x256xf32>
    %14 = arith.mulf %13, %10 : vector<1x256xf32>
    %15 = vector.extract_strided_slice %8 {offsets = [1, 0], sizes = [1, 256], strides = [1, 1]} : vector<24x256xf32> to vector<1x256xf32>
    %16 = arith.mulf %15, %11 : vector<1x256xf32>
    %17 = arith.addf %14, %16 : vector<1x256xf32>
    %18 = vector.extract_strided_slice %8 {offsets = [2, 0], sizes = [1, 256], strides = [1, 1]} : vector<24x256xf32> to vector<1x256xf32>
    %19 = arith.mulf %18, %12 : vector<1x256xf32>
    %20 = arith.addf %17, %19 : vector<1x256xf32>
    %21 = vector.extract_strided_slice %8 {offsets = [3, 0], sizes = [1, 256], strides = [1, 1]} : vector<24x256xf32> to vector<1x256xf32>
    %22 = arith.addf %20, %21 : vector<1x256xf32>
    %23 = vector.extract_strided_slice %8 {offsets = [4, 0], sizes = [1, 256], strides = [1, 1]} : vector<24x256xf32> to vector<1x256xf32>
    %24 = arith.mulf %23, %10 : vector<1x256xf32>
    %25 = vector.extract_strided_slice %8 {offsets = [5, 0], sizes = [1, 256], strides = [1, 1]} : vector<24x256xf32> to vector<1x256xf32>
    %26 = arith.mulf %25, %11 : vector<1x256xf32>
    %27 = arith.addf %24, %26 : vector<1x256xf32>
    %28 = vector.extract_strided_slice %8 {offsets = [6, 0], sizes = [1, 256], strides = [1, 1]} : vector<24x256xf32> to vector<1x256xf32>
    %29 = arith.mulf %28, %12 : vector<1x256xf32>
    %30 = arith.addf %27, %29 : vector<1x256xf32>
    %31 = vector.extract_strided_slice %8 {offsets = [7, 0], sizes = [1, 256], strides = [1, 1]} : vector<24x256xf32> to vector<1x256xf32>
    %32 = arith.addf %30, %31 : vector<1x256xf32>
    %33 = vector.extract_strided_slice %8 {offsets = [8, 0], sizes = [1, 256], strides = [1, 1]} : vector<24x256xf32> to vector<1x256xf32>
    %34 = arith.mulf %33, %10 : vector<1x256xf32>
    %35 = vector.extract_strided_slice %8 {offsets = [9, 0], sizes = [1, 256], strides = [1, 1]} : vector<24x256xf32> to vector<1x256xf32>
    %36 = arith.mulf %35, %11 : vector<1x256xf32>
    %37 = arith.addf %34, %36 : vector<1x256xf32>
    %38 = vector.extract_strided_slice %8 {offsets = [10, 0], sizes = [1, 256], strides = [1, 1]} : vector<24x256xf32> to vector<1x256xf32>
    %39 = arith.mulf %38, %12 : vector<1x256xf32>
    %40 = arith.addf %37, %39 : vector<1x256xf32>
    %41 = vector.extract_strided_slice %8 {offsets = [11, 0], sizes = [1, 256], strides = [1, 1]} : vector<24x256xf32> to vector<1x256xf32>
    %42 = arith.addf %40, %41 : vector<1x256xf32>
    %43 = tpu.concatenate %22, %32, %42 in 0 : vector<1x256xf32>, vector<1x256xf32>, vector<1x256xf32> -> vector<3x256xf32>
    %c0_12 = arith.constant 0 : index
    %c0_13 = arith.constant 0 : index
    %c0_14 = arith.constant 0 : index
    %44 = vector.load %arg6[%c0_12, %c0_13, %c0_14] : memref<2x3x256xf32, #tpu.memory_space<vmem>>, vector<1x3x256xf32>
    %45 = vector.shape_cast %44 : vector<1x3x256xf32> to vector<3x256xf32>
    %46 = vector.shape_cast %43 : vector<3x256xf32> to vector<1x3x256xf32>
    tpu.vector_store %arg6[%c0_12, %c0_13, %c0_14], %46 {strides = array<i32>} : memref<2x3x256xf32, #tpu.memory_space<vmem>>, vector<1x3x256xf32>,
    %cst_15 = arith.constant dense<0.000000e+00> : vector<3x16xf32>
    %47 = tpu.matmul %43, %9, %cst_15 {dimension_numbers = #tpu.dot_dimension_numbers<[1], [0], [0], [1], [0, 0, 1, 1], [], []>, precision = #tpu.contract_precision<fp32>} : vector<3x256xf32>, vector<256x16xf32>, vector<3x16xf32> -> vector<3x16xf32>
    %c0_16 = arith.constant 0 : index
    %c0_17 = arith.constant 0 : index
    %c0_18 = arith.constant 0 : index
    %48 = vector.load %arg7[%c0_16, %c0_17, %c0_18] : memref<2x3x16xf32, #tpu.memory_space<vmem>>, vector<1x3x16xf32>
    %49 = vector.shape_cast %48 : vector<1x3x16xf32> to vector<3x16xf32>
    %50 = vector.shape_cast %47 : vector<3x16xf32> to vector<1x3x16xf32>
    tpu.vector_store %arg7[%c0_16, %c0_17, %c0_18], %50 {strides = array<i32>} : memref<2x3x16xf32, #tpu.memory_space<vmem>>, vector<1x3x16xf32>,
    %51 = vector.extract_strided_slice %5 {offsets = [1, 0], sizes = [1, 256], strides = [1, 1]} : vector<2x768xf32> to vector<1x256xf32>
    %52 = vector.extract_strided_slice %5 {offsets = [1, 256], sizes = [1, 256], strides = [1, 1]} : vector<2x768xf32> to vector<1x256xf32>
    %53 = vector.extract_strided_slice %5 {offsets = [1, 512], sizes = [1, 256], strides = [1, 1]} : vector<2x768xf32> to vector<1x256xf32>
    %54 = vector.extract_strided_slice %8 {offsets = [12, 0], sizes = [1, 256], strides = [1, 1]} : vector<24x256xf32> to vector<1x256xf32>
    %55 = arith.mulf %54, %51 : vector<1x256xf32>
    %56 = vector.extract_strided_slice %8 {offsets = [13, 0], sizes = [1, 256], strides = [1, 1]} : vector<24x256xf32> to vector<1x256xf32>
    %57 = arith.mulf %56, %52 : vector<1x256xf32>
    %58 = arith.addf %55, %57 : vector<1x256xf32>
    %59 = vector.extract_strided_slice %8 {offsets = [14, 0], sizes = [1, 256], strides = [1, 1]} : vector<24x256xf32> to vector<1x256xf32>
    %60 = arith.mulf %59, %53 : vector<1x256xf32>
    %61 = arith.addf %58, %60 : vector<1x256xf32>
    %62 = vector.extract_strided_slice %8 {offsets = [15, 0], sizes = [1, 256], strides = [1, 1]} : vector<24x256xf32> to vector<1x256xf32>
    %63 = arith.addf %61, %62 : vector<1x256xf32>
    %64 = vector.extract_strided_slice %8 {offsets = [16, 0], sizes = [1, 256], strides = [1, 1]} : vector<24x256xf32> to vector<1x256xf32>
    %65 = arith.mulf %64, %51 : vector<1x256xf32>
    %66 = vector.extract_strided_slice %8 {offsets = [17, 0], sizes = [1, 256], strides = [1, 1]} : vector<24x256xf32> to vector<1x256xf32>
    %67 = arith.mulf %66, %52 : vector<1x256xf32>
    %68 = arith.addf %65, %67 : vector<1x256xf32>
    %69 = vector.extract_strided_slice %8 {offsets = [18, 0], sizes = [1, 256], strides = [1, 1]} : vector<24x256xf32> to vector<1x256xf32>
    %70 = arith.mulf %69, %53 : vector<1x256xf32>
    %71 = arith.addf %68, %70 : vector<1x256xf32>
    %72 = vector.extract_strided_slice %8 {offsets = [19, 0], sizes = [1, 256], strides = [1, 1]} : vector<24x256xf32> to vector<1x256xf32>
    %73 = arith.addf %71, %72 : vector<1x256xf32>
    %74 = vector.extract_strided_slice %8 {offsets = [20, 0], sizes = [1, 256], strides = [1, 1]} : vector<24x256xf32> to vector<1x256xf32>
    %75 = arith.mulf %74, %51 : vector<1x256xf32>
    %76 = vector.extract_strided_slice %8 {offsets = [21, 0], sizes = [1, 256], strides = [1, 1]} : vector<24x256xf32> to vector<1x256xf32>
    %77 = arith.mulf %76, %52 : vector<1x256xf32>
    %78 = arith.addf %75, %77 : vector<1x256xf32>
    %79 = vector.extract_strided_slice %8 {offsets = [22, 0], sizes = [1, 256], strides = [1, 1]} : vector<24x256xf32> to vector<1x256xf32>
    %80 = arith.mulf %79, %53 : vector<1x256xf32>
    %81 = arith.addf %78, %80 : vector<1x256xf32>
    %82 = vector.extract_strided_slice %8 {offsets = [23, 0], sizes = [1, 256], strides = [1, 1]} : vector<24x256xf32> to vector<1x256xf32>
    %83 = arith.addf %81, %82 : vector<1x256xf32>
    %84 = tpu.concatenate %63, %73, %83 in 0 : vector<1x256xf32>, vector<1x256xf32>, vector<1x256xf32> -> vector<3x256xf32>
    %c1 = arith.constant 1 : index
    %c0_19 = arith.constant 0 : index
    %c0_20 = arith.constant 0 : index
    %85 = vector.load %arg6[%c1, %c0_19, %c0_20] : memref<2x3x256xf32, #tpu.memory_space<vmem>>, vector<1x3x256xf32>
    %86 = vector.shape_cast %85 : vector<1x3x256xf32> to vector<3x256xf32>
    %87 = vector.shape_cast %84 : vector<3x256xf32> to vector<1x3x256xf32>
    tpu.vector_store %arg6[%c1, %c0_19, %c0_20], %87 {strides = array<i32>} : memref<2x3x256xf32, #tpu.memory_space<vmem>>, vector<1x3x256xf32>,
    %cst_21 = arith.constant dense<0.000000e+00> : vector<3x16xf32>
    %88 = tpu.matmul %84, %9, %cst_21 {dimension_numbers = #tpu.dot_dimension_numbers<[1], [0], [0], [1], [0, 0, 1, 1], [], []>, precision = #tpu.contract_precision<fp32>} : vector<3x256xf32>, vector<256x16xf32>, vector<3x16xf32> -> vector<3x16xf32>
    %c1_22 = arith.constant 1 : index
    %c0_23 = arith.constant 0 : index
    %c0_24 = arith.constant 0 : index
    %89 = vector.load %arg7[%c1_22, %c0_23, %c0_24] : memref<2x3x16xf32, #tpu.memory_space<vmem>>, vector<1x3x16xf32>
    %90 = vector.shape_cast %89 : vector<1x3x16xf32> to vector<3x16xf32>
    %91 = vector.shape_cast %88 : vector<3x16xf32> to vector<1x3x16xf32>
    tpu.vector_store %arg7[%c1_22, %c0_23, %c0_24], %91 {strides = array<i32>} : memref<2x3x16xf32, #tpu.memory_space<vmem>>, vector<1x3x16xf32>,
    return
  }
}

</mosaic_0001>

<bundles_post_ra>
// kernel: tpu_custom_call.1
= control target key start
LH: loop header
LB: loop body
LE: loop exit
PB: predicated region body
PF: predicated region fallthrough
CT: control target
= control target key end

     0   :  { %13 = vsyncpa [#allocation3], 0  ;;  %s5729_s24 = smov [#allocation2]   ;;  %s7444_s0 = inlined_call_operand.vmem [shape: f32[2,52], index: 0, kind: input, shape index: {}]   ;;  %s7445_s1 = inlined_call_operand.vmem [shape: f32[1,768], index: 1, kind: input, shape index: {}]   ;;  %s7446_s2 = inlined_call_operand.hbm [shape: f32[52,768], index: 2, kind: input, shape index: {}]   ;;  %s7447_s3 = inlined_call_operand.vmem [shape: f32[5,256], index: 3, kind: input, shape index: {}]   ;;  %s7448_s4 = inlined_call_operand.vmem [shape: f32[24,5], index: 4, kind: input, shape index: {}]   ;;  %s7449_s5 = inlined_call_operand.vmem [shape: f32[256,16], index: 5, kind: input, shape index: {}]   ;;  %s7450_s6 = inlined_call_operand.vmem [shape: f32[2,3,256], index: 6, kind: output, shape index: {0}]   ;;  %s7451_s7 = inlined_call_operand.vmem [shape: f32[2,3,16], index: 7, kind: output, shape index: {1}]  }
   0x1   :  { %s23_s25 = sshll.u32 %s5729_s24, 4  ;;  %s5705_s28 = scalar_lea.hbm %s7446_s2, 5376  ;;  %s24_s25 = int_to_ptr.vmem [resolvable:$true] %s23_s25 }
   0x2   :  { %p5706_p0 = scmp.ne.s32.totalorder %s7446_s2, %s5705_s28  ;;  %p5709_p1 = scmp.lt.u32.totalorder %s5705_s28, %s7446_s2 }
   0x4   :  { %p5711_p2 = pnand %p5709_p1, %p5706_p0 }
   0x6   :  { %5714 = shalt.err (!%p5711_p2)
}
   0x7   :  { %s5715_s10 = scalar_lea.vmem %s24_s25, 5376  ;;  %p5720_p4 = scmp.lt.s32.totalorder %s24_s25, %s24_s25 }
   0x8   :  { %p5716_p3 = scmp.ne.s32.totalorder %s24_s25, %s5715_s10  ;;  %p5721_p5 = scmp.lt.s32.totalorder %s5715_s10, %s5715_s10 }
   0xa   :  { %p5722_p6 = por %p5721_p5, %p5720_p4 }
   0xc   :  { %p5723_p7 = pnand %p5722_p6, %p5716_p3 }
   0xe   :  { %5726 = shalt.err (!%p5723_p7)
}
   0xf   :  { %s5730_s11 = smov 768   ;;  %s5731_s12 = smov 48  }
  0x10   :  { %29 = dma.hbm_to_vmem [thread:$0]  %s7446_s2, 5376, %s24_s25, [#allocation3], %s5730_s11, %s5730_s11, %s5731_s12  }
  0x11   :  { %5727 = dma.done.wait [#allocation3], 5376  }
  0x12   :  { %5728 = vsyncadd [#allocation3], 4294961920  ;;  %v7466_v0 = vmov 0.0   ;;  %v42_v1 = vld [vmem:[#allocation2 + $0x8] sm:$0xff]  ;;  %v48_v2 = vld [vmem:[#allocation2 + $0x38] sm:$0xff]  ;;  %vm87_vm0 = vcmask 1043456  }
  0x13   :  { %184 = vmatprep.mubr.f32.mxu1 %v7466_v0  ;;  %330 = vmatprep.mubr.f32.mxu0 %v7466_v0  ;;  %v41_v3 = vld [vmem:[#allocation2] sm:$0xff]  ;;  %v106_v4 = vand.u32 4294901760, %v42_v1  ;;  %v110_v5 = vand.u32 4294901760, %v48_v2  ;;  %v47_v6 = vld [vmem:[#allocation2 + $0x30] sm:$0xff]  ;;  %v54_v8 = vld [vmem:[#allocation2 + $0x68] sm:$0xff]  ;;  %vm83_vm1 = vcmask 424960  }
  0x14   :  { %v108_v7 = vand.u32 4294901760, %v41_v3  ;;  %v60_v9 = vld [vmem:[#allocation2 + $0x98] sm:$0xff]  ;;  %v112_v10 = vand.u32 4294901760, %v47_v6  ;;  %v114_v11 = vand.u32 4294901760, %v54_v8  ;;  %v53_v13 = vld [vmem:[#allocation2 + $0x60] sm:$0xff]  ;;  %v59_v14 = vld [vmem:[#allocation2 + $0x90] sm:$0xff] }
  0x15   :  { %v118_v12 = vand.u32 4294901760, %v60_v9  ;;  %v5787_v15 = vpack.c.bf16 %v110_v5, %v106_v4  ;;  %v116_v17 = vand.u32 4294901760, %v53_v13  ;;  %v120_v18 = vand.u32 4294901760, %v59_v14  ;;  %v66_v19 = vld [vmem:[#allocation2 + $0xc8] sm:$0xff]  ;;  %v72_v20 = vld [vmem:[#allocation2 + $0xf8] sm:$0xff]  ;;  %v65_v25 = vld [vmem:[#allocation2 + $0xc0] sm:$0xff] }
  0x16   :  { %v5789_v16 = vsub.f32 %v41_v3, %v108_v7  ;;  %v5791_v21 = vpack.c.bf16 %v112_v10, %v108_v7  ;;  %v5793_v22 = vsub.f32 %v47_v6, %v112_v10  ;;  %v5797_v24 = vsub.f32 %v54_v8, %v114_v11  ;;  %v71_v26 = vld [vmem:[#allocation2 + $0xf0] sm:$0xff]  ;;  %v78_v39 = vld [vmem:[#allocation2 + $0x128] sm:$0xf]  ;;  %v77_v48 = vld [vmem:[#allocation2 + $0x120] sm:$0xf] }
  0x17   :  { %v5795_v23 = vpack.c.bf16 %v118_v12, %v114_v11  ;;  %5042 = vmatprep.subr.bf16.mxu1 %v5787_v15  ;;  %v5800_v27 = vsub.f32 %v60_v9, %v118_v12  ;;  %v5802_v28 = vpack.c.bf16 %v120_v18, %v116_v17  ;;  %v5804_v29 = vsub.f32 %v53_v13, %v116_v17  ;;  %v44_v57 = vld [vmem:[#allocation2 + $0x18] sm:$0xff]  ;;  %v50_v62 = vld [vmem:[#allocation2 + $0x48] sm:$0xff]  ;;  %v43_v13 = vld [vmem:[#allocation2 + $0x10] sm:$0xff] }
  0x18   :  { %v5806_v30 = vsub.f32 %v59_v14, %v120_v18  ;;  %5044 = vmatpush1.bf16.msra.mxu1 %v5791_v21  ;;  %v122_v31 = vand.u32 4294901760, %v66_v19  ;;  %v126_v32 = vand.u32 4294901760, %v72_v20  ;;  %v5809_v33 = vsub.f32 %v42_v1, %v106_v4  ;;  %v40_v4 = vld [vmem:[%s7444_s0] sm:$0x3] }
  0x19   :  { %v5811_v34 = vsub.f32 %v48_v2, %v110_v5  ;;  %5046 = vmatprep.subr.bf16.mxu1 %v5795_v23  ;;  %v124_v35 = vand.u32 4294901760, %v65_v25  ;;  %v128_v36 = vand.u32 4294901760, %v71_v26  ;;  %v7463_v37 = vand.u32 4294901760, %v5789_v16  ;;  %v49_v14 = vld [vmem:[#allocation2 + $0x40] sm:$0xff] }
  0x1a   :  { %v7460_v38 = vand.u32 4294901760, %v5793_v22  ;;  %v5816_v40 = vpack.c.bf16 %v126_v32, %v122_v31  ;;  %v5818_v41 = vsub.f32 %v66_v19, %v122_v31  ;;  %v5820_v42 = vsub.f32 %v72_v20, %v126_v32 }
  0x1b   :  { %v7465_v43 = vand.u32 4294901760, %v5809_v33  ;;  %v7464_v44 = vand.u32 4294901760, %v5811_v34  ;;  %v5824_v45 = vpack.c.bf16 %v128_v36, %v124_v35  ;;  %v5826_v46 = vsub.f32 %v65_v25, %v124_v35 }
  0x1c   :  { %v5828_v47 = vsub.f32 %v71_v26, %v128_v36  ;;  %5048 = vmatpush1.bf16.msra.mxu1 %v5802_v28  ;;  %v205_v50 = vsub.f32 %v5789_v16, %v7463_v37  ;;  %v217_v51 = vsub.f32 %v5793_v22, %v7460_v38  ;;  %v5841_v52 = vsel %vm87_vm0, %v78_v39, 0 }
  0x1d   :  { %v199_v49 = vsub.f32 %v5809_v33, %v7465_v43  ;;  %5050 = vmatprep.subr.bf16.mxu1 %v5816_v40  ;;  %v211_v53 = vsub.f32 %v5811_v34, %v7464_v44  ;;  %v5848_v54 = vand.u32 4294901760, %v5841_v52  ;;  %v7459_v55 = vand.u32 4294901760, %v5797_v24 }
  0x1e   :  { %v7458_v56 = vand.u32 4294901760, %v5800_v27  ;;  %v206_v59 = vand.u32 4294901760, %v205_v50  ;;  %v218_v60 = vand.u32 4294901760, %v217_v51  ;;  %v5853_v61 = vsel %vm87_vm0, %v77_v48, 0 }
  0x1f   :  { %v200_v58 = vand.u32 4294901760, %v199_v49  ;;  %v212_v63 = vand.u32 4294901760, %v211_v53  ;;  %v223_v1 = vsub.f32 %v5797_v24, %v7459_v55  ;;  %v5862_v3 = vand.u32 4294901760, %v5853_v61 }
  0x20   :  { %v235_v2 = vsub.f32 %v5800_v27, %v7458_v56  ;;  %5052 = vmatpush1.bf16.msra.mxu1 %v5824_v45  ;;  %v5055_v5 = vpack.c.bf16 %v218_v60, %v206_v59  ;;  %v7457_v6 = vand.u32 4294901760, %v5804_v29  ;;  %v7455_v7 = vand.u32 4294901760, %v5806_v30  ;;  %v55_v59 = vld [vmem:[#allocation2 + $0x70] sm:$0xff] }
  0x21   :  { %v727_v8 = vand.u32 4294901760, %v44_v57  ;;  %v5053_v9 = vpack.c.bf16 %v212_v63, %v200_v58  ;;  %131 = vmatprep.subr.mxu1 %v5848_v54  ;;  %v224_v10 = vand.u32 4294901760, %v223_v1  ;;  %v731_v12 = vand.u32 4294901760, %v50_v62  ;;  %v62_v58 = vld [vmem:[#allocation2 + $0xa8] sm:$0xff] }
  0x22   :  { %v236_v11 = vand.u32 4294901760, %v235_v2  ;;  %v229_v17 = vsub.f32 %v5804_v29, %v7457_v6  ;;  %v241_v18 = vsub.f32 %v5806_v30, %v7455_v7  ;;  %v85_v20 = vsel %vm83_vm1, %v40_v4, 0  ;;  %v79_v6 = vld [vmem:[#allocation2 + $0x130] sm:$0xf] }
  0x23   :  { %v5877_v19 = vsub.f32 %v44_v57, %v727_v8  ;;  %5054 = vmatprep.subr.bf16.mxu0 %v5053_v9  ;;  %v5880_v26 = vpack.c.bf16 %v731_v12, %v727_v8  ;;  %v5882_v31 = vsub.f32 %v50_v62, %v731_v12  ;;  %v5884_v32 = vand.u32 4294901760, %v85_v20  ;;  %v56_v57 = vld [vmem:[#allocation2 + $0x78] sm:$0xff]  ;;  %v61_v12 = vld [vmem:[#allocation2 + $0xa0] sm:$0xff] }
  0x24   :  { %v5057_v25 = vpack.c.bf16 %v236_v11, %v224_v10  ;;  %5056 = vmatpush1.bf16.msra.mxu0 %v5055_v5  ;;  %133 = vmatpush1.msra.mxu1 %v5862_v3  ;;  %v230_v35 = vand.u32 4294901760, %v229_v17  ;;  %v242_v36 = vand.u32 4294901760, %v241_v18  ;;  %v729_v39 = vand.u32 4294901760, %v43_v13 }
  0x25   :  { %7584 = vst [vmem:[#allocation5_spill] sm:$0xff] %v5880_v26  ;;  %v733_v48 = vand.u32 4294901760, %v49_v14  ;;  %5114 = vmatprep.subr.bf16.mxu1 %v5880_v26  ;;  %v5889_v49 = vsub.f32 %v85_v20, %v5884_v32  ;;  %v7454_v50 = vand.u32 4294901760, %v5818_v41  ;;  %v7453_v51 = vand.u32 4294901760, %v5820_v42 }
  0x26   :  { %5058 = vmatprep.subr.bf16.mxu0 %v5057_v25  ;;  %v7452_v53 = vand.u32 4294901760, %v5826_v46  ;;  %v5059_v60 = vpack.c.bf16 %v242_v36, %v230_v35  ;;  %v5896_v63 = vsub.f32 %v43_v13, %v729_v39  ;;  %v7456_v9 = vand.u32 4294901760, %v5828_v47 }
  0x27   :  { %v5894_v62 = vpack.c.bf16 %v733_v48, %v729_v39  ;;  %v5898_v1 = vsub.f32 %v49_v14, %v733_v48  ;;  %v5901_v2 = vand.u32 4294901760, %v5889_v49  ;;  %v247_v4 = vsub.f32 %v5818_v41, %v7454_v50  ;;  %v68_v48 = vld [vmem:[#allocation2 + $0xd8] sm:$0xff] }
  0x28   :  { %v259_v5 = vsub.f32 %v5820_v42, %v7453_v51  ;;  %v253_v8 = vsub.f32 %v5826_v46, %v7452_v53  ;;  %5060 = vmatpush1.bf16.msra.mxu0 %v5059_v60  ;;  %v735_v10 = vand.u32 4294901760, %v56_v57  ;;  %v739_v11 = vand.u32 4294901760, %v62_v58  ;;  %v74_v60 = vld [vmem:[#allocation2 + $0x108] sm:$0xff] }
  0x29   :  { %7585 = vst [vmem:[#allocation6_spill] sm:$0xff] %v5894_v62  ;;  %v737_v13 = vand.u32 4294901760, %v55_v59  ;;  %v188_v14 = vsub.f32 %v5889_v49, %v5901_v2  ;;  %v248_v17 = vand.u32 4294901760, %v247_v4  ;;  %v265_v25 = vsub.f32 %v5828_v47, %v7456_v9  ;;  %v80_v9 = vld [vmem:[#allocation2 + $0x138] sm:$0xf] }
  0x2a   :  { %v260_v18 = vand.u32 4294901760, %v259_v5  ;;  %v254_v20 = vand.u32 4294901760, %v253_v8  ;;  %v5918_v35 = vpack.c.bf16 %v739_v11, %v735_v10  ;;  %v5920_v36 = vsub.f32 %v56_v57, %v735_v10 }
  0x2b   :  { %v5922_v39 = vsub.f32 %v62_v58, %v739_v11  ;;  %v5924_v53 = vand.u32 4294901760, %v188_v14  ;;  %v741_v50 = vand.u32 4294901760, %v61_v12  ;;  %v5926_v7 = vsub.f32 %v55_v59, %v737_v13  ;;  %v67_v58 = vld [vmem:[#allocation2 + $0xd0] sm:$0xff] }
  0x2c   :  { %7586 = vst [vmem:[#allocation7_spill] sm:$0xff] %v5918_v35  ;;  %v5061_v51 = vpack.c.bf16 %v260_v18, %v248_v17  ;;  %v266_v4 = vand.u32 4294901760, %v265_v25  ;;  %v5930_v5 = vsub.f32 %v5841_v52, %v5848_v54  ;;  %v5934_v8 = vsub.f32 %v5853_v61, %v5862_v3  ;;  %v73_v17 = vld [vmem:[#allocation2 + $0x100] sm:$0xff] }
  0x2d   :  { %v5065_v57 = vpack.c.bf16 %v5811_v34, %v5809_v33  ;;  %190 = vmatmul.mubr.f32.vlgmr.msra.gmra.mrb[0].mxu1 %v5924_v53  ;;  %v5939_v10 = vpack.c.bf16 %v741_v50, %v737_v13  ;;  %v5941_v59 = vsub.f32 %v61_v12, %v741_v50  ;;  %v743_v11 = vand.u32 4294901760, %v68_v48 }
  0x2e   :  { %5062 = vmatprep.subr.bf16.mxu0 %v5061_v51  ;;  %v747_v14 = vand.u32 4294901760, %v74_v60  ;;  %5116 = vmatpush1.bf16.msra.mxu1 %v5894_v62  ;;  %v5063_v52 = vpack.c.bf16 %v266_v4, %v254_v20  ;;  %v7461_v61 = vand.u32 4294901760, %v5930_v5  ;;  %v7462_v18 = vand.u32 4294901760, %v5934_v8 }
  0x2f   :  { %7587 = vst [vmem:[#allocation8_spill] sm:$0xff] %v5939_v10  ;;  %v5067_v25 = vpack.c.bf16 %v5793_v22, %v5789_v16  ;;  %805 = vmatprep.mubr.f32.mxu1 %v7466_v0  ;;  %5118 = vmatprep.subr.bf16.mxu1 %v5918_v35  ;;  %v5952_v51 = vsub.f32 %v68_v48, %v743_v11  ;;  %v745_v13 = vand.u32 4294901760, %v67_v58  ;;  %v749_v56 = vand.u32 4294901760, %v73_v17 }
  0x30   :  { %v5950_v50 = vpack.c.bf16 %v747_v14, %v743_v11  ;;  %v5954_v12 = vsub.f32 %v74_v60, %v747_v14  ;;  %5064 = vmatpush1.bf16.msra.mxu0 %v5063_v52  ;;  %v271_v20 = vsub.f32 %v5930_v5, %v7461_v61  ;;  %v277_v4 = vsub.f32 %v5934_v8, %v7462_v18 }
  0x31   :  { %v5069_v55 = vpack.c.bf16 %v5800_v27, %v5797_v24  ;;  %v5964_v38 = vsub.f32 %v67_v58, %v745_v13  ;;  %v98_v48 = vsel %vm87_vm0, %v80_v9, 0  ;;  %v5071_v60 = vpack.c.bf16 %v5806_v30, %v5804_v29 }
  0x32   :  { %7588 = vst [vmem:[#allocation9_spill] sm:$0xff] %v5950_v50  ;;  %v95_v11 = vsel %vm87_vm0, %v79_v6, 0  ;;  %5120 = vmatpush1.bf16.msra.mxu1 %v5939_v10  ;;  %v272_v14 = vand.u32 4294901760, %v271_v20  ;;  %v278_v52 = vand.u32 4294901760, %v277_v4  ;;  %v5971_v61 = vpack.c.bf16 %v749_v56, %v745_v13 }
  0x33   :  { %v5973_v18 = vsub.f32 %v73_v17, %v749_v56  ;;  %5122 = vmatprep.subr.bf16.mxu1 %v5950_v50  ;;  %v5976_v37 = vand.u32 4294901760, %v98_v48  ;;  %v5978_v58 = vand.u32 4294901760, %v95_v11  ;;  %v7468_v9 = vand.u32 4294901760, %v5877_v19 }
  0x34   :  { %7589 = vst [vmem:[#allocation10_spill] sm:$0xff] %v5971_v61  ;;  %v7469_v44 = vand.u32 4294901760, %v5882_v31  ;;  %273 = vmatprep.subr.mxu0 %v272_v14  ;;  %v7474_v6 = vand.u32 4294901760, %v5896_v63  ;;  %v7475_v20 = vand.u32 4294901760, %v5898_v1  ;;  %v5073_v13 = vpack.c.bf16 %v5820_v42, %v5818_v41 }
  0x35   :  { %v5075_v56 = vpack.c.bf16 %v5828_v47, %v5826_v46  ;;  %279 = vmatpush1.msra.mxu0 %v278_v52  ;;  %v5989_v17 = vsub.f32 %v95_v11, %v5978_v58  ;;  %v820_v4 = vsub.f32 %v5877_v19, %v7468_v9  ;;  %v7484_v0 = vand.u32 4294901760, %v5922_v39 }
  0x36   :  { %v832_v14 = vsub.f32 %v5882_v31, %v7469_v44  ;;  %5066 = vmatprep.subr.bf16.mxu0 %v5065_v57  ;;  %332 = vmatmul.mubr.f32.vlgmr.msra.gmra.mrb[0].mxu0 %v5884_v32  ;;  %v826_v52 = vsub.f32 %v5896_v63, %v7474_v6  ;;  %v838_v11 = vsub.f32 %v5898_v1, %v7475_v20  ;;  %v7590_v57 = vand.u32 4294901760, %v5920_v36 }
  0x37   :  { %5068 = vmatpush1.bf16.msra.mxu0 %v5067_v25  ;;  %5124 = vmatpush1.bf16.msra.mxu1 %v5971_v61  ;;  %v821_v44 = vand.u32 4294901760, %v820_v4  ;;  %v861_v10 = vand.u32 4294901760, %v5941_v59  ;;  %v856_v9 = vsub.f32 %v5922_v39, %v7484_v0  ;;  %v7591_v25 = vand.u32 4294901760, %v5926_v7 }
  0x38   :  { %v833_v43 = vand.u32 4294901760, %v832_v14  ;;  %v844_v50 = vsub.f32 %v5920_v36, %v7590_v57  ;;  %5070 = vmatprep.subr.bf16.mxu0 %v5069_v55  ;;  %752 = vmatprep.subr.mxu1 %v5976_v37  ;;  %v827_v6 = vand.u32 4294901760, %v826_v52  ;;  %v839_v20 = vand.u32 4294901760, %v838_v11 }
  0x39   :  { %v850_v4 = vsub.f32 %v5926_v7, %v7591_v25  ;;  %v862_v57 = vsub.f32 %v5941_v59, %v861_v10  ;;  %v7592_v35 = vmov 0.0   ;;  %v867_v55 = vand.u32 4294901760, %v5952_v51 }
  0x3a   :  { %v5125_v14 = vpack.c.bf16 %v833_v43, %v821_v44  ;;  %v845_v61 = vand.u32 4294901760, %v844_v50  ;;  %430 = vmatprep.mubr.f32.mxu0 %v7592_v35  ;;  %v5127_v52 = vpack.c.bf16 %v839_v20, %v827_v6  ;;  %v857_v11 = vand.u32 4294901760, %v856_v9 }
  0x3b   :  { %v851_v62 = vand.u32 4294901760, %v850_v4  ;;  %v879_v26 = vand.u32 4294901760, %v5954_v12  ;;  %5072 = vmatpush1.bf16.msra.mxu0 %v5071_v60  ;;  %754 = vmatpush1.msra.mxu1 %v5978_v58  ;;  %v863_v0 = vand.u32 4294901760, %v862_v57  ;;  %v868_v43 = vsub.f32 %v5952_v51, %v867_v55 }
  0x3c   :  { %v873_v44 = vand.u32 4294901760, %v5964_v38  ;;  %v885_v50 = vand.u32 4294901760, %v5973_v18  ;;  %5126 = vmatprep.subr.bf16.mxu1 %v5125_v14  ;;  %811 = vmatmul.mubr.f32.vlgmr.msra.gmra.mrb[2].mxu1 %v5924_v53  ;;  %v5129_v6 = vpack.c.bf16 %v857_v11, %v845_v61  ;;  %v6036_v60 = vsub.f32 %v98_v48, %v5976_v37 }
  0x3d   :  { %v880_v9 = vsub.f32 %v5954_v12, %v879_v26  ;;  %v897_v20 = vand.u32 4294901760, %v5989_v17  ;;  %5128 = vmatpush1.bf16.msra.mxu1 %v5127_v52  ;;  %5074 = vmatprep.subr.bf16.mxu0 %v5073_v13  ;;  %v5131_v25 = vpack.c.bf16 %v863_v0, %v851_v62  ;;  %v869_v4 = vand.u32 4294901760, %v868_v43 }
  0x3e   :  { %v874_v14 = vsub.f32 %v5964_v38, %v873_v44  ;;  %v886_v61 = vsub.f32 %v5973_v18, %v885_v50  ;;  %5130 = vmatprep.subr.bf16.mxu1 %v5129_v6  ;;  %v891_v11 = vand.u32 4294901760, %v6036_v60  ;;  %951 = vmatprep.mubr.f32.mxu1 %v7592_v35  ;;  %vm2021_vm2 = vcmask 1044480  }
  0x3f   :  { %v881_v57 = vand.u32 4294901760, %v880_v9  ;;  %5076 = vmatpush1.bf16.msra.mxu0 %v5075_v56  ;;  %v898_v43 = vsub.f32 %v5989_v17, %v897_v20  ;;  %v5137_v9 = vpack.c.bf16 %v5882_v31, %v5877_v19  ;;  %vm2011_vm3 = vcmask 39936  }
  0x40   :  { %v875_v48 = vand.u32 4294901760, %v874_v14  ;;  %v887_v52 = vand.u32 4294901760, %v886_v61  ;;  %376 = vmatprep.subr.mxu0 %v5930_v5  ;;  %v892_v62 = vsub.f32 %v6036_v60, %v891_v11  ;;  %v5143_v14 = vpack.c.bf16 %v5941_v59, %v5926_v7 }
  0x41   :  { %v5133_v0 = vpack.c.bf16 %v881_v57, %v869_v4  ;;  %5132 = vmatpush1.bf16.msra.mxu1 %v5131_v25  ;;  %v899_v56 = vand.u32 4294901760, %v898_v43  ;;  %v5139_v25 = vpack.c.bf16 %v5898_v1, %v5896_v63  ;;  %v5141_v4 = vpack.c.bf16 %v5922_v39, %v5920_v36 }
  0x42   :  { %v5135_v13 = vpack.c.bf16 %v887_v52, %v875_v48  ;;  %v893_v6 = vand.u32 4294901760, %v892_v62  ;;  %v5145_v61 = vpack.c.bf16 %v5954_v12, %v5952_v51  ;;  %v7593_v57 = vand.u32 4294901760, %v5809_v33  ;;  %v76_v51 = vld [vmem:[#allocation2 + $0x118] sm:$0xff] }
  0x43   :  { %5134 = vmatprep.subr.bf16.mxu1 %v5133_v0  ;;  %379 = vmatpush1.msra.mxu0 %v5934_v8  ;;  %v7594_v48 = vand.u32 4294901760, %v5811_v34  ;;  %v7595_v0 = vand.u32 4294901760, %v5789_v16  ;;  %v7596_v62 = vand.u32 4294901760, %v5793_v22  ;;  %v5147_v43 = vpack.c.bf16 %v5973_v18, %v5964_v38 }
  0x44   :  { %5078 = vmatprep.subr.bf16.mxu0 %v5787_v15  ;;  %433 = vmatmul.mubr.f32.vlgmr.msra.gmra.mrb[0].mxu0 %v5889_v49  ;;  %v7599_v16 = vand.u32 4294901760, %v5804_v29  ;;  %v7600_v22 = vand.u32 4294901760, %v5806_v30  ;;  %v7604_v29 = vand.u32 4294901760, %v5828_v47  ;;  %v7605_v30 = vld [vmem:[#allocation5_spill] sm:$0xff]  ;;  %v7611_v47 = vand.u32 4294901760, %v5934_v8 }
  0x45   :  { %5080 = vmatpush1.bf16.msra.mxu0 %v5791_v21  ;;  %5136 = vmatpush1.bf16.msra.mxu1 %v5135_v13  ;;  %v5089_v52 = vpack.c.bf16 %v7594_v48, %v7593_v57  ;;  %v5091_v13 = vpack.c.bf16 %v7596_v62, %v7595_v0  ;;  %v46_v57 = vld [vmem:[#allocation2 + $0x28] sm:$0xff]  ;;  %v52_v48 = vld [vmem:[#allocation2 + $0x58] sm:$0xff]  ;;  %v45_v0 = vld [vmem:[#allocation2 + $0x20] sm:$0xff]  ;;  %v7613_v62 = vand.u32 4294901760, %v5877_v19  ;;  %v7614_v8 = vand.u32 4294901760, %v5882_v31 }
  0x46   :  { %5082 = vmatprep.subr.bf16.mxu0 %v5795_v23  ;;  %894 = vmatprep.subr.mxu1 %v893_v6  ;;  %v7597_v6 = vand.u32 4294901760, %v5797_v24  ;;  %v5095_v33 = vpack.c.bf16 %v7600_v22, %v7599_v16  ;;  %v7601_v24 = vand.u32 4294901760, %v5818_v41  ;;  %v7607_v41 = vld [vmem:[#allocation7_spill] sm:$0xff]  ;;  %v1352_v16 = vand.u32 4294901760, %v52_v48 }
  0x47   :  { %517 = vmatprep.mubr.f32.mxu0 %v7592_v35  ;;  %v7618_v22 = vand.u32 4294901760, %v5922_v39  ;;  %v1350_v19 = vand.u32 4294901760, %v45_v0  ;;  %v5169_v39 = vpack.c.bf16 %v879_v26, %v867_v55  ;;  %v82_v55 = vld [vmem:[#allocation2 + $0x148] sm:$0xf]  ;;  %vm2745_vm4 = vcmask 1040384  }
  0x48   :  { %v6157_v59 = vsub.f32 %v52_v48, %v1352_v16  ;;  %vm2748_vm5 = vcmask 1041408   ;;  %vm3618_vm6 = vcmask 124928  }
  0x49   :  { %5084 = vmatpush1.bf16.msra.mxu0 %v5802_v28  ;;  %900 = vmatpush1.msra.mxu1 %v899_v56  ;;  %v7598_v56 = vand.u32 4294901760, %v5800_v27  ;;  %v7602_v27 = vand.u32 4294901760, %v5820_v42  ;;  %v7608_v42 = vand.u32 4294901760, %v5930_v5  ;;  %v51_v5 = vld [vmem:[#allocation2 + $0x50] sm:$0xff]  ;;  %v6161_v38 = vsub.f32 %v45_v0, %v1350_v19 }
  0x4a   :  { %5138 = vmatprep.subr.bf16.mxu1 %v5137_v9  ;;  %953 = vmatmul.mubr.f32.vlgmr.msra.gmra.mrb[2].mxu1 %v5884_v32 }
  0x4b   :  { %5140 = vmatpush1.bf16.msra.mxu1 %v5139_v25  ;;  %5086 = vmatprep.subr.bf16.mxu0 %v5816_v40  ;;  %v5093_v9 = vpack.c.bf16 %v7598_v56, %v7597_v6  ;;  %v5097_v34 = vpack.c.bf16 %v7602_v27, %v7601_v24  ;;  %v7603_v25 = vand.u32 4294901760, %v5826_v46  ;;  %v7610_v46 = vld [vmem:[#allocation9_spill] sm:$0xff]  ;;  %v7615_v6 = vand.u32 4294901760, %v5896_v63  ;;  %v57_v27 = vld [vmem:[#allocation2 + $0x80] sm:$0xff] }
  0x4c   :  { %5142 = vmatprep.subr.bf16.mxu1 %v5141_v4  ;;  %1051 = vmatprep.mubr.f32.mxu1 %v7592_v35  ;;  %v7616_v56 = vand.u32 4294901760, %v5898_v1  ;;  %v1354_v24 = vand.u32 4294901760, %v51_v5  ;;  %v7619_v1 = vand.u32 4294901760, %v5926_v7  ;;  %v1358_v12 = vand.u32 4294901760, %v57_v27 }
  0x4d   :  { %5088 = vmatpush1.bf16.msra.mxu0 %v5824_v45  ;;  %v5099_v4 = vpack.c.bf16 %v7604_v29, %v7603_v25  ;;  %v69_v29 = vld [vmem:[#allocation2 + $0xe0] sm:$0xff] }
  0x4e   :  { %464 = vmatprep.subr.mxu0 %v5848_v54  ;;  %v6159_v26 = vpack.c.bf16 %v1354_v24, %v1350_v19  ;;  %v6163_v18 = vsub.f32 %v51_v5, %v1354_v24  ;;  %v6177_v48 = vsub.f32 %v57_v27, %v1358_v12  ;;  %v1368_v5 = vand.u32 4294901760, %v76_v51 }
  0x4f   :  { %5144 = vmatpush1.bf16.msra.mxu1 %v5143_v14  ;;  %v7606_v14 = vld [vmem:[#allocation6_spill] sm:$0xff] }
  0x50   :  { %5146 = vmatprep.subr.bf16.mxu1 %v5145_v61  ;;  %v7609_v61 = vld [vmem:[#allocation8_spill] sm:$0xff]  ;;  %v6206_v24 = vsub.f32 %v76_v51, %v1368_v5 }
  0x51   :  { %466 = vmatpush1.msra.mxu0 %v5862_v3 }
  0x52   :  { %5090 = vmatprep.subr.bf16.mxu0 %v5089_v52  ;;  %521 = vmatmul.mubr.f32.vlgmr.msra.gmra.mrb[0].mxu0 %v5901_v2  ;;  %v7612_v52 = vld [vmem:[#allocation10_spill] sm:$0xff] }
  0x53   :  { %5092 = vmatpush1.bf16.msra.mxu0 %v5091_v13  ;;  %5148 = vmatpush1.bf16.msra.mxu1 %v5147_v43  ;;  %v5161_v13 = vpack.c.bf16 %v7614_v8, %v7613_v62  ;;  %v64_v43 = vld [vmem:[#allocation2 + $0xb8] sm:$0xff]  ;;  %v1366_v62 = vand.u32 4294901760, %v69_v29 }
  0x54   :  { %5094 = vmatprep.subr.bf16.mxu0 %v5093_v9  ;;  %997 = vmatprep.subr.mxu1 %v6036_v60  ;;  %v1348_v9 = vand.u32 4294901760, %v46_v57  ;;  %v1360_v63 = vand.u32 4294901760, %v64_v43 }
  0x55   :  { %633 = vmatprep.mubr.f32.mxu0 %v7592_v35 }
  0x56   :  { %v6153_v25 = vpack.c.bf16 %v1352_v16, %v1348_v9  ;;  %v6155_v7 = vsub.f32 %v46_v57, %v1348_v9  ;;  %v2010_v57 = vld [vmem:[%s7447_s3 + $0x8] sm:$0x1f] }
  0x57   :  { %5096 = vmatpush1.bf16.msra.mxu0 %v5095_v33  ;;  %1000 = vmatpush1.msra.mxu1 %v5989_v17 }
  0x58   :  { %5150 = vmatprep.subr.bf16.mxu1 %v7605_v30  ;;  %1054 = vmatmul.mubr.f32.vlgmr.msra.gmra.mrb[2].mxu1 %v5889_v49 }
  0x59   :  { %5152 = vmatpush1.bf16.msra.mxu1 %v7606_v14  ;;  %5098 = vmatprep.subr.bf16.mxu0 %v5097_v34  ;;  %v63_v34 = vld [vmem:[#allocation2 + $0xb0] sm:$0xff] }
  0x5a   :  { %5154 = vmatprep.subr.bf16.mxu1 %v7607_v41  ;;  %1138 = vmatprep.mubr.f32.mxu1 %v7592_v35 }
  0x5b   :  { %5100 = vmatpush1.bf16.msra.mxu0 %v5099_v4  ;;  %v6171_v4 = vsub.f32 %v64_v43, %v1360_v63  ;;  %v1452_v43 = vand.u32 4294901760, %v6157_v59 }
  0x5c   :  { %578 = vmatprep.subr.mxu0 %v7608_v42  ;;  %v1362_v42 = vand.u32 4294901760, %v63_v34 }
  0x5d   :  { %5156 = vmatpush1.bf16.msra.mxu1 %v7609_v61  ;;  %v1453_v27 = vsub.f32 %v6157_v59, %v1452_v43 }
  0x5e   :  { %5158 = vmatprep.subr.bf16.mxu1 %v7610_v46  ;;  %v6194_v9 = vpack.c.bf16 %v1362_v42, %v1358_v12  ;;  %v6196_v16 = vsub.f32 %v63_v34, %v1362_v42 }
  0x5f   :  { %582 = vmatpush1.msra.mxu0 %v7611_v47  ;;  %v81_v47 = vld [vmem:[#allocation2 + $0x140] sm:$0xf] }
  0x60   :  { %5102 = vmatprep.subr.bf16.mxu0 %v5787_v15  ;;  %635 = vmatmul.mubr.f32.vlgmr.msra.gmra.mrb[0].mxu0 %v5884_v32  ;;  %v58_v15 = vld [vmem:[#allocation2 + $0x88] sm:$0xff] }
  0x61   :  { %5104 = vmatpush1.bf16.msra.mxu0 %v5791_v21  ;;  %5160 = vmatpush1.bf16.msra.mxu1 %v7612_v52  ;;  %v5163_v21 = vpack.c.bf16 %v7616_v56, %v7615_v6  ;;  %v1356_v31 = vand.u32 4294901760, %v58_v15  ;;  %v1446_v6 = vand.u32 4294901760, %v6161_v38  ;;  %v1458_v56 = vand.u32 4294901760, %v6163_v18 }
  0x62   :  { %5106 = vmatprep.subr.bf16.mxu0 %v5795_v23  ;;  %1085 = vmatprep.subr.mxu1 %v5976_v37  ;;  %v7617_v23 = vand.u32 4294901760, %v5920_v36  ;;  %v5167_v36 = vpack.c.bf16 %v861_v10, %v7619_v1  ;;  %v70_v10 = vld [vmem:[#allocation2 + $0xe8] sm:$0xff] }
  0x63   :  { %719 = vmatprep.mubr.f32.mxu0 %v7592_v35  ;;  %v1364_v0 = vand.u32 4294901760, %v70_v10 }
  0x64   :  { %v5165_v33 = vpack.c.bf16 %v7618_v22, %v7617_v23 }
  0x65   :  { %5108 = vmatpush1.bf16.msra.mxu0 %v5802_v28  ;;  %1087 = vmatpush1.msra.mxu1 %v5978_v58  ;;  %v5171_v28 = vpack.c.bf16 %v885_v50, %v873_v44  ;;  %v6167_v44 = vpack.c.bf16 %v1360_v63, %v1356_v31  ;;  %v6169_v50 = vsub.f32 %v58_v15, %v1356_v31  ;;  %v1440_v15 = vand.u32 4294901760, %v6155_v7 }
  0x66   :  { %5162 = vmatprep.subr.bf16.mxu1 %v5161_v13  ;;  %1142 = vmatmul.mubr.f32.vlgmr.msra.gmra.mrb[2].mxu1 %v5901_v2  ;;  %v6183_v13 = vsel %vm87_vm0, %v82_v55, 0  ;;  %v6204_v19 = vsub.f32 %v70_v10, %v1364_v0  ;;  %v6233_v10 = vsub.f32 %v69_v29, %v1366_v62  ;;  %v7485_v29 = vand.u32 4294901760, %v6206_v24 }
  0x67   :  { %5164 = vmatpush1.bf16.msra.mxu1 %v5163_v21  ;;  %5110 = vmatprep.subr.bf16.mxu0 %v5816_v40  ;;  %v75_v40 = vld [vmem:[#allocation2 + $0x110] sm:$0xff]  ;;  %v2026_v21 = vsel %vm2021_vm2, %v2010_v57, 0  ;;  %v1464_v23 = vand.u32 4294901760, %v6169_v50  ;;  %v6211_v31 = vand.u32 4294901760, %v6183_v13  ;;  %v1441_v63 = vsub.f32 %v6155_v7, %v1440_v15 }
  0x68   :  { %5166 = vmatprep.subr.bf16.mxu1 %v5165_v33  ;;  %1254 = vmatprep.mubr.f32.mxu1 %v7592_v35  ;;  %v1370_v8 = vand.u32 4294901760, %v75_v40  ;;  %v6202_v33 = vpack.c.bf16 %v1368_v5, %v1364_v0  ;;  %v6219_v1 = vand.u32 4294901760, %v2026_v21  ;;  %v7486_v42 = vand.u32 4294901760, %v6204_v19 }
  0x69   :  { %5112 = vmatpush1.bf16.msra.mxu0 %v5824_v45  ;;  %v2009_v45 = vld [vmem:[%s7447_s3] sm:$0x1f]  ;;  %v1465_v60 = vsub.f32 %v6169_v50, %v1464_v23  ;;  %v1454_v57 = vand.u32 4294901760, %v1453_v27  ;;  %v6283_v27 = vsub.f32 %v6183_v13, %v6211_v31 }
  0x6a   :  { %666 = vmatprep.subr.mxu0 %v5848_v54  ;;  %v6188_v54 = vsel %vm87_vm0, %v81_v47, 0  ;;  %v2023_v22 = vsel %vm2021_vm2, %v2009_v45, 0  ;;  %v6235_v51 = vsub.f32 %v75_v40, %v1370_v8  ;;  %v6242_v12 = vpack.c.bf16 %v1370_v8, %v1366_v62 }
  0x6b   :  { %5168 = vmatpush1.bf16.msra.mxu1 %v5167_v36  ;;  %v1447_v36 = vsub.f32 %v6161_v38, %v1446_v6  ;;  %v6231_v34 = vand.u32 4294901760, %v2023_v22  ;;  %v6253_v40 = vand.u32 4294901760, %v6188_v54  ;;  %v1442_v47 = vand.u32 4294901760, %v1441_v63 }
  0x6c   :  { %5170 = vmatprep.subr.bf16.mxu1 %v5169_v39  ;;  %v1459_v39 = vsub.f32 %v6163_v18, %v1458_v56  ;;  %v6256_v0 = vsub.f32 %v2026_v21, %v6219_v1  ;;  %v1466_v45 = vand.u32 4294901760, %v1465_v60  ;;  %v1494_v8 = vand.u32 4294901760, %v6233_v10 }
  0x6d   :  { %668 = vmatpush1.msra.mxu0 %v5862_v3  ;;  %v1476_v3 = vand.u32 4294901760, %v6171_v4  ;;  %v1448_v5 = vand.u32 4294901760, %v1447_v36  ;;  %v1506_v21 = vand.u32 4294901760, %v6235_v51 }
  0x6e   :  { %721 = vmatmul.mubr.f32.vlgmr.msra.gmra.mrb[0].mxu0 %v5884_v32  ;;  %5186 = vmatprep.subr.bf16.mxu0 %v6153_v25  ;;  %v1460_v62 = vand.u32 4294901760, %v1459_v39  ;;  %v2130_v36 = vand.u32 4294901760, %v6256_v0  ;;  %v5197_v39 = vpack.c.bf16 %v1454_v57, %v1442_v47  ;;  %v1495_v13 = vsub.f32 %v6233_v10, %v1494_v8 }
  0x6f   :  { %5172 = vmatpush1.bf16.msra.mxu1 %v5171_v28  ;;  %5188 = vmatpush1.bf16.msra.mxu0 %v6159_v26  ;;  %v7488_v28 = vand.u32 4294901760, %v6177_v48  ;;  %v1477_v55 = vsub.f32 %v6171_v4, %v1476_v3  ;;  %v1512_v57 = vand.u32 4294901760, %v6283_v27 }
  0x70   :  { %1199 = vmatprep.subr.mxu1 %v891_v11  ;;  %5190 = vmatprep.subr.bf16.mxu0 %v6167_v44  ;;  %v7487_v11 = vand.u32 4294901760, %v6196_v16 }
  0x71   :  { %1426 = vmatprep.mubr.f32.mxu0 %v7592_v35  ;;  %v1471_v17 = vsub.f32 %v6177_v48, %v7488_v28  ;;  %v1478_v63 = vand.u32 4294901760, %v1477_v55 }
  0x73   :  { %1203 = vmatpush1.msra.mxu1 %v897_v20  ;;  %5192 = vmatpush1.bf16.msra.mxu0 %v6194_v9  ;;  %v6264_v20 = vsub.f32 %v2023_v22, %v6231_v34  ;;  %v1501_v22 = vsub.f32 %v6206_v24, %v7485_v29  ;;  %v1472_v60 = vand.u32 4294901760, %v1471_v17  ;;  %v5199_v29 = vpack.c.bf16 %v1460_v62, %v1448_v5 }
  0x74   :  { %5174 = vmatprep.subr.bf16.mxu1 %v7605_v30  ;;  %1256 = vmatmul.mubr.f32.vlgmr.msra.gmra.mrb[2].mxu1 %v5884_v32  ;;  %v1483_v30 = vsub.f32 %v6196_v16, %v7487_v11  ;;  %v1507_v11 = vsub.f32 %v6235_v51, %v1506_v21  ;;  %v1496_v17 = vand.u32 4294901760, %v1495_v13  ;;  %v5209_v13 = vpack.c.bf16 %v6157_v59, %v6155_v7 }
  0x75   :  { %5176 = vmatpush1.bf16.msra.mxu1 %v7606_v14  ;;  %5194 = vmatprep.subr.bf16.mxu0 %v6202_v33  ;;  %v1489_v14 = vsub.f32 %v6204_v19, %v7486_v42  ;;  %v2136_v55 = vand.u32 4294901760, %v6264_v20  ;;  %v1502_v47 = vand.u32 4294901760, %v1501_v22  ;;  %v7620_v7 = vand.u32 4294901760, %v6177_v48 }
  0x76   :  { %5178 = vmatprep.subr.bf16.mxu1 %v7607_v41  ;;  %1340 = vmatprep.mubr.f32.mxu1 %v7592_v35  ;;  %v6290_v41 = vsub.f32 %v6188_v54, %v6253_v40  ;;  %v1484_v42 = vand.u32 4294901760, %v1483_v30  ;;  %v5201_v54 = vpack.c.bf16 %v1478_v63, %v1466_v45  ;;  %v1508_v45 = vand.u32 4294901760, %v1507_v11  ;;  %v2007_v11 = vld [vmem:[%s7448_s4 + $0x8] sm:$0xff] }
  0x77   :  { %5196 = vmatpush1.bf16.msra.mxu0 %v6242_v12  ;;  %v1490_v28 = vand.u32 4294901760, %v1489_v14  ;;  %v2137_v5 = vsub.f32 %v6264_v20, %v2136_v55  ;;  %v1513_v63 = vsub.f32 %v6283_v27, %v1512_v57  ;;  %v7621_v59 = vand.u32 4294901760, %v6196_v16 }
  0x78   :  { %1373 = vmatprep.subr.mxu0 %v6211_v31  ;;  %v5203_v62 = vpack.c.bf16 %v1484_v42, %v1472_v60  ;;  %v1518_v30 = vand.u32 4294901760, %v6290_v41 }
  0x79   :  { %5180 = vmatpush1.bf16.msra.mxu1 %v7609_v61  ;;  %v2131_v61 = vsub.f32 %v6256_v0, %v2130_v36 }
  0x7a   :  { %5182 = vmatprep.subr.bf16.mxu1 %v7610_v46  ;;  %v2006_v46 = vld [vmem:[%s7448_s4] sm:$0xff] }
  0x7b   :  { %1375 = vmatpush1.msra.mxu0 %v6253_v40  ;;  %v2132_v14 = vand.u32 4294901760, %v2131_v61  ;;  %v2013_v22 = vsel %vm2011_vm3, %v2006_v46, 0  ;;  %v5211_v61 = vpack.c.bf16 %v6163_v18, %v6161_v38  ;;  %v5239_v38 = vpack.c.bf16 %v7621_v59, %v7620_v7 }
  0x7c   :  { %5198 = vmatprep.subr.bf16.mxu0 %v5197_v39  ;;  %1432 = vmatmul.mubr.f32.vlgmr.msra.gmra.mrb[2].mxu0 %v5924_v53  ;;  %v5205_v53 = vpack.c.bf16 %v1502_v47, %v1490_v28  ;;  %v1519_v28 = vsub.f32 %v6290_v41, %v1518_v30  ;;  %v6329_v42 = vand.u32 4294901760, %v2013_v22  ;;  %v2016_v39 = vsel %vm2011_vm3, %v2007_v11, 0 }
  0x7d   :  { %5184 = vmatpush1.bf16.msra.mxu1 %v7612_v52  ;;  %5200 = vmatpush1.bf16.msra.mxu0 %v5199_v29  ;;  %v2138_v52 = vand.u32 4294901760, %v2137_v5  ;;  %v1514_v29 = vand.u32 4294901760, %v1513_v63  ;;  %v5213_v5 = vpack.c.bf16 %v6171_v4, %v6169_v50  ;;  %v7622_v18 = vand.u32 4294901760, %v6204_v19 }
  0x7e   :  { %1287 = vmatprep.subr.mxu1 %v5976_v37  ;;  %5202 = vmatprep.subr.bf16.mxu0 %v5201_v54  ;;  %v5207_v37 = vpack.c.bf16 %v1508_v45, %v1496_v17  ;;  %v1520_v60 = vand.u32 4294901760, %v1519_v28  ;;  %v6340_v54 = vand.u32 4294901760, %v2016_v39  ;;  %v5217_v17 = vpack.c.bf16 %v6206_v24, %v6204_v19 }
  0x7f   :  { %1572 = vmatprep.mubr.f32.mxu0 %v7592_v35  ;;  %v6361_v45 = vsub.f32 %v2013_v22, %v6329_v42  ;;  %v5233_v22 = vpack.c.bf16 %v1452_v43, %v1440_v15  ;;  %v7623_v50 = vand.u32 4294901760, %v6206_v24 }
  0x80   :  { %v6369_v63 = vsub.f32 %v2016_v39, %v6340_v54 }
  0x81   :  { %1289 = vmatpush1.msra.mxu1 %v5978_v58  ;;  %5204 = vmatpush1.bf16.msra.mxu0 %v5203_v62  ;;  %v2008_v58 = vld [vmem:[%s7448_s4 + $0x10] sm:$0xff]  ;;  %v5215_v62 = vpack.c.bf16 %v6196_v16, %v6177_v48  ;;  %v5241_v4 = vpack.c.bf16 %v7623_v50, %v7622_v18 }
  0x82   :  { %1342 = vmatmul.mubr.f32.vlgmr.msra.gmra.mrb[2].mxu1 %v5884_v32  ;;  %5206 = vmatprep.subr.bf16.mxu0 %v5205_v53  ;;  %v2019_v47 = vsel %vm2011_vm3, %v2008_v58, 0  ;;  %v5219_v53 = vpack.c.bf16 %v6235_v51, %v6233_v10  ;;  %v6503_v10 = vld [vmem:[%s7449_s5 + $0x90] sm:$0xff]  ;;  %v6508_v51 = vld [vmem:[%s7449_s5 + $0x98] sm:$0xff] }
  0x83   :  { %2133 = vmatprep.subr.mxu1 %v2132_v14  ;;  %2202 = vmatprep.mubr.f32.mxu1 %v7592_v35  ;;  %v6351_v46 = vand.u32 4294901760, %v2019_v47 }
  0x84   :  { %2139 = vmatpush1.msra.mxu1 %v2138_v52 }
  0x85   :  { %5208 = vmatpush1.bf16.msra.mxu0 %v5207_v37  ;;  %2226 = vmatprep.subr.mxu1 %v6256_v0  ;;  %v6378_v14 = vsub.f32 %v2019_v47, %v6351_v46  ;;  %v2097_v0 = vand.u32 4294901760, %v6361_v45 }
  0x86   :  { %2204 = vmatmul.mubr.f32.vlgmr.msra.gmra.mrb[4].mxu1 %v6329_v42  ;;  %1515 = vmatprep.subr.mxu0 %v1514_v29 }
  0x87   :  { %2209 = vmatprep.mubr.f32.mxu1 %v7592_v35  ;;  %2229 = vmatpush1.msra.mxu1 %v6264_v20  ;;  %v5235_v20 = vpack.c.bf16 %v1458_v56, %v1446_v6  ;;  %v2607_v56 = vld [vmem:[%s7449_s5 + $0x80] sm:$0xff] }
  0x88   :  { %2318 = vmatprep.subr.mxu1 %v6219_v1  ;;  %v2805_v16 = vand.u32 4294901760, %v2607_v56 }
  0x89   :  { %1521 = vmatpush1.msra.mxu0 %v1520_v60 }
  0x8a   :  { %5210 = vmatprep.subr.bf16.mxu0 %v5209_v13  ;;  %2211 = vmatmul.mubr.f32.gmra.mrb[6].mxu1 %v6340_v54 }
  0x8b   :  { %1574 = vmatmul.mubr.f32.vlgmr.msra.gmra.mrb[2].mxu0 %v5884_v32  ;;  %2216 = vmatprep.mubr.f32.mxu1 %v7592_v35 }
  0x8c   :  { %5212 = vmatpush1.bf16.msra.mxu0 %v5211_v61  ;;  %1672 = vmatprep.mubr.f32.mxu0 %v7592_v35 }
  0x8d   :  { %5214 = vmatprep.subr.bf16.mxu0 %v5213_v5 }
  0x8e   :  { %2218 = vmatmul.mubr.f32.gmra.mrb[8].mxu1 %v6351_v46 }
  0x8f   :  { %2292 = vmatprep.mubr.f32.mxu1 %v7592_v35 }
  0x90   :  { %5216 = vmatpush1.bf16.msra.mxu0 %v5215_v62  ;;  %v2612_v62 = vld [vmem:[%s7449_s5 + $0xa8] sm:$0xff] }
  0x91   :  { %5218 = vmatprep.subr.bf16.mxu0 %v5217_v17  ;;  %v2820_v59 = vand.u32 4294901760, %v2612_v62 }
  0x92   :  { %2295 = vmatmul.mubr.f32.vlgmr.msra.gmra.mrb[4].mxu1 %v6361_v45 }
  0x93   :  { %2300 = vmatprep.mubr.f32.mxu1 %v7592_v35  ;;  %2320 = vmatpush1.msra.mxu1 %v6231_v34 }
  0x94   :  { %5220 = vmatpush1.bf16.msra.mxu0 %v5219_v53  ;;  %2414 = vmatprep.subr.mxu1 %v2130_v36  ;;  %v2108_v36 = vand.u32 4294901760, %v6369_v63 }
  0x95   :  { %1618 = vmatprep.subr.mxu0 %v6283_v27  ;;  %v6517_v27 = vld [vmem:[%s7449_s5 + $0x10] sm:$0xff] }
  0x96   :  { %2303 = vmatmul.mubr.f32.gmra.mrb[6].mxu1 %v6369_v63  ;;  %v2763_v52 = vand.u32 4294901760, %v6517_v27 }
  0x97   :  { %2308 = vmatprep.mubr.f32.mxu1 %v7592_v35 }
  0x98   :  { %1621 = vmatpush1.msra.mxu0 %v6290_v41  ;;  %v6522_v41 = vld [vmem:[%s7449_s5 + $0x18] sm:$0xff]  ;;  %v6549_v60 = vsub.f32 %v6517_v27, %v2763_v52 }
  0x99   :  { %5222 = vmatprep.subr.bf16.mxu0 %v6153_v25  ;;  %1675 = vmatmul.mubr.f32.vlgmr.msra.gmra.mrb[2].mxu0 %v5889_v49  ;;  %v2119_v49 = vand.u32 4294901760, %v6378_v14  ;;  %v2766_v11 = vand.u32 4294901760, %v6522_v41 }
  0x9a   :  { %5224 = vmatpush1.bf16.msra.mxu0 %v6159_v26  ;;  %2311 = vmatmul.mubr.f32.gmra.mrb[8].mxu1 %v6378_v14  ;;  %7630 = vst [vmem:[#allocation11_spill] sm:$0xff] %v6549_v60 }
  0x9b   :  { %5226 = vmatprep.subr.bf16.mxu0 %v6167_v44  ;;  %2383 = vmatprep.mubr.f32.mxu1 %v7592_v35  ;;  %v2120_v15 = vsub.f32 %v6378_v14, %v2119_v49  ;;  %v6554_v13 = vsub.f32 %v6522_v41, %v2766_v11  ;;  %v6570_v14 = vld [vmem:[%s7449_s5 + $0x20] sm:$0xff] }
  0x9c   :  { %1759 = vmatprep.mubr.f32.mxu0 %v7592_v35 }
  0x9d   :  { %v2121_v43 = vand.u32 4294901760, %v2120_v15  ;;  %7631 = vst [vmem:[#allocation12_spill] sm:$0xff] %v6554_v13 }
  0x9e   :  { %5228 = vmatpush1.bf16.msra.mxu0 %v6194_v9  ;;  %2387 = vmatmul.mubr.f32.vlgmr.msra.gmra.mrb[4].mxu1 %v2097_v0 }
  0x9f   :  { %5230 = vmatprep.subr.bf16.mxu0 %v6202_v33  ;;  %2392 = vmatprep.mubr.f32.mxu1 %v7592_v35 }
  0xa0   :  { %2418 = vmatpush1.msra.mxu1 %v2136_v55  ;;  %v5237_v55 = vpack.c.bf16 %v1476_v3, %v1464_v23  ;;  %v6486_v3 = vsub.f32 %v2607_v56, %v2805_v16 }
  0xa1   :  { %2504 = vmatprep.subr.mxu1 %v6219_v1 }
  0xa2   :  { %5232 = vmatpush1.bf16.msra.mxu0 %v6242_v12  ;;  %2396 = vmatmul.mubr.f32.gmra.mrb[6].mxu1 %v2108_v36  ;;  %7624 = vst [vmem:[#allocation5_spill] sm:$0xff] %v6486_v3 }
  0xa3   :  { %1706 = vmatprep.subr.mxu0 %v6211_v31  ;;  %2401 = vmatprep.mubr.f32.mxu1 %v7592_v35 }
  0xa6   :  { %1708 = vmatpush1.msra.mxu0 %v6253_v40  ;;  %2405 = vmatmul.mubr.f32.gmra.mrb[8].mxu1 %v2119_v49 }
  0xa7   :  { %5234 = vmatprep.subr.bf16.mxu0 %v5233_v22  ;;  %1763 = vmatmul.mubr.f32.vlgmr.msra.gmra.mrb[2].mxu0 %v5901_v2  ;;  %v5243_v2 = vpack.c.bf16 %v1506_v21, %v1494_v8  ;;  %v2811_v8 = vand.u32 4294901760, %v6503_v10  ;;  %v2814_v21 = vand.u32 4294901760, %v6508_v51  ;;  %v7494_v22 = vand.u32 4294901760, %v6554_v13 }
  0xa8   :  { %5236 = vmatpush1.bf16.msra.mxu0 %v5235_v20  ;;  %2481 = vmatprep.mubr.f32.mxu1 %v7592_v35 }
  0xa9   :  { %5238 = vmatprep.subr.bf16.mxu0 %v5237_v55  ;;  %1875 = vmatprep.mubr.f32.mxu0 %v7592_v35  ;;  %v6538_v29 = vsub.f32 %v6508_v51, %v2814_v21  ;;  %v6623_v51 = vld [vmem:[%s7449_s5 + $0x30] sm:$0xff] }
  0xaa   :  { %2483 = vmatmul.mubr.f32.vlgmr.msra.gmra.mrb[4].mxu1 %v6329_v42 }
  0xab   :  { %2488 = vmatprep.mubr.f32.mxu1 %v7592_v35  ;;  %2506 = vmatpush1.msra.mxu1 %v6231_v34  ;;  %7629 = vst [vmem:[#allocation10_spill] sm:$0xff] %v6538_v29  ;;  %v7496_v5 = vand.u32 4294901760, %v6538_v29 }
  0xac   :  { %5240 = vmatpush1.bf16.msra.mxu0 %v5239_v38  ;;  %v6590_v38 = vld [vmem:[%s7449_s5 + $0x28] sm:$0xff] }
  0xad   :  { %5242 = vmatprep.subr.bf16.mxu0 %v5241_v4  ;;  %v3005_v49 = vsub.f32 %v6538_v29, %v7496_v5  ;;  %v2893_v4 = vsub.f32 %v6554_v13, %v7494_v22  ;;  %v2772_v56 = vand.u32 4294901760, %v6590_v38 }
  0xae   :  { %2490 = vmatmul.mubr.f32.gmra.mrb[6].mxu1 %v6340_v54 }
  0xaf   :  { %2495 = vmatprep.mubr.f32.mxu1 %v7592_v35  ;;  %v3006_v50 = vand.u32 4294901760, %v3005_v49 }
  0xb0   :  { %5244 = vmatpush1.bf16.msra.mxu0 %v5243_v2  ;;  %v2769_v2 = vand.u32 4294901760, %v6570_v14 }
  0xb1   :  { %1820 = vmatprep.subr.mxu0 %v1512_v57 }
  0xb2   :  { %2497 = vmatmul.mubr.f32.gmra.mrb[8].mxu1 %v6351_v46 }
  0xb3   :  { %2569 = vmatprep.mubr.f32.mxu1 %v7592_v35 }
  0xb4   :  { %1824 = vmatpush1.msra.mxu0 %v1518_v30 }
  0xb5   :  { %5246 = vmatprep.subr.bf16.mxu0 %v6153_v25  ;;  %1877 = vmatmul.mubr.f32.vlgmr.msra.gmra.mrb[2].mxu0 %v5884_v32  ;;  %v2098_v25 = vsub.f32 %v6361_v45, %v2097_v0 }
  0xb6   :  { %5248 = vmatpush1.bf16.msra.mxu0 %v6159_v26  ;;  %2571 = vmatmul.mubr.f32.vlgmr.msra.gmra.mrb[4].mxu1 %v6329_v42  ;;  %v6535_v42 = vsub.f32 %v6503_v10, %v2811_v8  ;;  %v2614_v10 = vld [vmem:[%s7449_s5 + $0xb8] sm:$0xff] }
  0xb7   :  { %5250 = vmatprep.subr.bf16.mxu0 %v6167_v44  ;;  %2576 = vmatprep.mubr.f32.mxu1 %v7592_v35  ;;  %v2099_v26 = vand.u32 4294901760, %v2098_v25  ;;  %v2109_v44 = vsub.f32 %v6369_v63, %v2108_v36  ;;  %v7495_v63 = vand.u32 4294901760, %v6549_v60 }
  0xb8   :  { %1961 = vmatprep.mubr.f32.mxu0 %v7592_v35  ;;  %7628 = vst [vmem:[#allocation9_spill] sm:$0xff] %v6535_v42  ;;  %v7497_v61 = vand.u32 4294901760, %v6535_v42 }
  0xb9   :  { %v2110_v48 = vand.u32 4294901760, %v2109_v44  ;;  %v2886_v55 = vsub.f32 %v6549_v60, %v7495_v63  ;;  %v6600_v44 = vsub.f32 %v2612_v62, %v2820_v59  ;;  %v6721_v63 = vpack.c.bf16 %v2766_v11, %v2763_v52 }
  0xba   :  { %5252 = vmatpush1.bf16.msra.mxu0 %v6194_v9  ;;  %2578 = vmatmul.mubr.f32.gmra.mrb[6].mxu1 %v6340_v54  ;;  %v2608_v9 = vld [vmem:[%s7449_s5 + $0x88] sm:$0xff]  ;;  %v2998_v36 = vsub.f32 %v6535_v42, %v7497_v61 }
  0xbb   :  { %5254 = vmatprep.subr.bf16.mxu0 %v6202_v33  ;;  %2583 = vmatprep.mubr.f32.mxu1 %v7592_v35  ;;  %v2808_v23 = vand.u32 4294901760, %v2608_v9  ;;  %v6477_v33 = vld [vmem:[%s7449_s5] sm:$0xff]  ;;  %v2887_v25 = vand.u32 4294901760, %v2886_v55  ;;  %7636 = vst [vmem:[#allocation17_spill] sm:$0xff] %v6600_v44 }
  0xbc   :  { %v2757_v19 = vand.u32 4294901760, %v6477_v33  ;;  %v2999_v18 = vand.u32 4294901760, %v2998_v36 }
  0xbd   :  { %v6564_v17 = vpack.c.bf16 %v2808_v23, %v2805_v16  ;;  %v7492_v16 = vand.u32 4294901760, %v6600_v44 }
  0xbe   :  { %5256 = vmatpush1.bf16.msra.mxu0 %v6242_v12  ;;  %2585 = vmatmul.mubr.f32.gmra.mrb[8].mxu1 %v6351_v46  ;;  %v7506_v12 = vand.u32 4294901760, %v6486_v3  ;;  %v2611_v46 = vld [vmem:[%s7449_s5 + $0xa0] sm:$0xff]  ;;  %v6607_v15 = vpack.c.bf16 %v3006_v50, %v2999_v18 }
  0xbf   :  { %1908 = vmatprep.subr.mxu0 %v6211_v31  ;;  %v6488_v31 = vsub.f32 %v2608_v9, %v2808_v23  ;;  %7632 = vst [vmem:[#allocation13_spill] sm:$0xff] %v6564_v17  ;;  %5258 = vmatprep.subr.bf16.mxu1 %v6564_v17  ;;  %v2817_v7 = vand.u32 4294901760, %v2611_v46  ;;  %v6615_v23 = vsub.f32 %v6570_v14, %v2769_v2 }
  0xc0   :  { %v2984_v37 = vsub.f32 %v6486_v3, %v7506_v12  ;;  %7637 = vst [vmem:[#allocation18_spill] sm:$0xff] %v6607_v15 }
  0xc1   :  { %7625 = vst [vmem:[#allocation6_spill] sm:$0xff] %v6488_v31  ;;  %7638 = vst [vmem:[#allocation19_spill] sm:$0xff] %v6615_v23  ;;  %v7490_v62 = vand.u32 4294901760, %v6615_v23 }
  0xc2   :  { %1910 = vmatpush1.msra.mxu0 %v6253_v40  ;;  %v7503_v40 = vand.u32 4294901760, %v6488_v31  ;;  %v2985_v54 = vand.u32 4294901760, %v2984_v37 }
  0xc3   :  { %1963 = vmatmul.mubr.f32.vlgmr.msra.gmra.mrb[2].mxu0 %v5884_v32  ;;  %2029 = vmatprep.subr.mxu0 %v6219_v1  ;;  %v6493_v1 = vsub.f32 %v6477_v33, %v2757_v19  ;;  %v2900_v55 = vsub.f32 %v6615_v23, %v7490_v62  ;;  %v2616_v33 = vld [vmem:[%s7449_s5 + $0xc8] sm:$0xff] }
  0xc4   :  { %2031 = vmatpush1.msra.mxu0 %v6231_v34  ;;  %2094 = vmatprep.mubr.f32.mxu0 %v7592_v35  ;;  %v2991_v28 = vsub.f32 %v6488_v31, %v7503_v40 }
  0xc5   :  { %7626 = vst [vmem:[#allocation7_spill] sm:$0xff] %v6493_v1  ;;  %v7502_v57 = vand.u32 4294901760, %v6493_v1 }
  0xc6   :  { %v2992_v47 = vand.u32 4294901760, %v2991_v28  ;;  %v6631_v28 = vsub.f32 %v6590_v38, %v2772_v56 }
  0xc7   :  { %2100 = vmatmul.mubr.f32.vlgmr.msra.gmra.mrb[4].mxu0 %v2099_v26  ;;  %v2872_v39 = vsub.f32 %v6493_v1, %v7502_v57  ;;  %v6598_v26 = vsub.f32 %v2611_v46, %v2817_v7  ;;  %v3019_v46 = vsub.f32 %v6600_v44, %v7492_v16 }
  0xc8   :  { %2105 = vmatprep.mubr.f32.mxu0 %v7592_v35  ;;  %v6572_v0 = vpack.c.bf16 %v2992_v47, %v2985_v54  ;;  %7640 = vst [vmem:[#allocation21_spill] sm:$0xff] %v6631_v28  ;;  %v6639_v54 = vpack.c.bf16 %v2814_v21, %v2811_v8  ;;  %v2775_v8 = vand.u32 4294901760, %v6623_v51 }
  0xc9   :  { %v2873_v45 = vand.u32 4294901760, %v2872_v39  ;;  %7635 = vst [vmem:[#allocation16_spill] sm:$0xff] %v6598_v26  ;;  %v7493_v9 = vand.u32 4294901760, %v6598_v26  ;;  %v3020_v49 = vand.u32 4294901760, %v3019_v46 }
  0xca   :  { %7633 = vst [vmem:[#allocation14_spill] sm:$0xff] %v6572_v0  ;;  %5290 = vmatprep.subr.bf16.mxu0 %v6572_v0 }
  0xcb   :  { %2111 = vmatmul.mubr.f32.gmra.mrb[6].mxu0 %v2110_v48  ;;  %v6605_v48 = vld [vmem:[%s7449_s5 + $0xb0] sm:$0xff]  ;;  %v3012_v47 = vsub.f32 %v6598_v26, %v7493_v9 }
  0xcc   :  { %2116 = vmatprep.mubr.f32.mxu0 %v7592_v35  ;;  %v6482_v35 = vld [vmem:[%s7449_s5 + $0x8] sm:$0xff]  ;;  %v2823_v39 = vand.u32 4294901760, %v6605_v48 }
  0xcd   :  { %v2760_v24 = vand.u32 4294901760, %v6482_v35  ;;  %v3013_v21 = vand.u32 4294901760, %v3012_v47  ;;  %v2901_v47 = vand.u32 4294901760, %v2900_v55  ;;  %v6706_v55 = vld [vmem:[%s7449_s5 + $0x48] sm:$0xff] }
  0xce   :  { %v6651_v36 = vsub.f32 %v6605_v48, %v2823_v39  ;;  %v2784_v27 = vand.u32 4294901760, %v6706_v55 }
  0xcf   :  { %2122 = vmatmul.mubr.f32.gmra.mrb[8].mxu0 %v2121_v43  ;;  %v6498_v34 = vsub.f32 %v6482_v35, %v2760_v24  ;;  %v2894_v43 = vand.u32 4294901760, %v2893_v4  ;;  %v6662_v50 = vpack.c.bf16 %v2760_v24, %v2757_v19  ;;  %v6679_v35 = vld [vmem:[%s7449_s5 + $0x40] sm:$0xff]  ;;  %v6681_v19 = vpack.c.bf16 %v2820_v59, %v2817_v7 }
  0xd0   :  { %7641 = vst [vmem:[#allocation22_spill] sm:$0xff] %v6651_v36  ;;  %v6683_v24 = vpack.c.bf16 %v3020_v49, %v3013_v21  ;;  %v2832_v49 = vand.u32 4294901760, %v2616_v33 }
  0xd1   :  { %7627 = vst [vmem:[#allocation8_spill] sm:$0xff] %v6498_v34  ;;  %v7498_v30 = vand.u32 4294901760, %v6498_v34  ;;  %v6626_v37 = vpack.c.bf16 %v2894_v43, %v2887_v25  ;;  %v7491_v25 = vand.u32 4294901760, %v6651_v36  ;;  %v2615_v43 = vld [vmem:[%s7449_s5 + $0xc0] sm:$0xff]  ;;  %5260 = vmatpush3.bf16.msra.mxu1 %v6662_v50 }
  0xd2   :  { %7643 = vst [vmem:[#allocation24_spill] sm:$0xff] %v6683_v24  ;;  %5262 = vmatprep.subr.bf16.mxu1 %v6639_v54  ;;  %v2829_v21 = vand.u32 4294901760, %v2615_v43 }
  0xd3   :  { %v2879_v58 = vsub.f32 %v6498_v34, %v7498_v30  ;;  %7639 = vst [vmem:[#allocation20_spill] sm:$0xff] %v6626_v37 }
  0xd4   :  { %v6727_v30 = vsub.f32 %v2615_v43, %v2829_v21 }
  0xd5   :  { %v2880_v53 = vand.u32 4294901760, %v2879_v58  ;;  %v6637_v58 = vld [vmem:[%s7449_s5 + $0x38] sm:$0xff]  ;;  %5264 = vmatpush3.bf16.msra.mxu1 %v6721_v63 }
  0xd6   :  { %v2778_v18 = vand.u32 4294901760, %v6637_v58  ;;  %7647 = vst [vmem:[#allocation28_spill] sm:$0xff] %v6727_v30  ;;  %5266 = vmatprep.subr.bf16.mxu1 %v6681_v19 }
  0xd7   :  { %v6581_v20 = vpack.c.bf16 %v2880_v53, %v2873_v45  ;;  %v7489_v45 = vand.u32 4294901760, %v6631_v28  ;;  %v2826_v53 = vand.u32 4294901760, %v2614_v10 }
  0xd8   :  { %v6698_v7 = vsub.f32 %v6637_v58, %v2778_v18 }
  0xd9   :  { %7634 = vst [vmem:[#allocation15_spill] sm:$0xff] %v6581_v20  ;;  %5292 = vmatpush3.bf16.msra.mxu0 %v6581_v20  ;;  %v2907_v4 = vsub.f32 %v6631_v28, %v7489_v45  ;;  %v6668_v48 = vsub.f32 %v2614_v10, %v2826_v53  ;;  %v6688_v10 = vsub.f32 %v6623_v51, %v2775_v8 }
  0xda   :  { %5294 = vmatprep.subr.bf16.mxu0 %v6607_v15  ;;  %v3026_v45 = vsub.f32 %v6651_v36, %v7491_v25  ;;  %7645 = vst [vmem:[#allocation26_spill] sm:$0xff] %v6698_v7  ;;  %v2617_v25 = vld [vmem:[%s7449_s5 + $0xd0] sm:$0xff]  ;;  %v7500_v61 = vand.u32 4294901760, %v6698_v7  ;;  %v6739_v11 = vpack.c.bf16 %v2826_v53, %v2823_v39 }
  0xdb   :  { %7642 = vst [vmem:[#allocation23_spill] sm:$0xff] %v6668_v48  ;;  %7644 = vst [vmem:[#allocation25_spill] sm:$0xff] %v6688_v10  ;;  %v2908_v46 = vand.u32 4294901760, %v2907_v4  ;;  %v7501_v62 = vand.u32 4294901760, %v6668_v48  ;;  %v7499_v59 = vand.u32 4294901760, %v6688_v10  ;;  %v2781_v4 = vand.u32 4294901760, %v6679_v35 }
  0xdc   :  { %v3027_v9 = vand.u32 4294901760, %v3026_v45  ;;  %v2835_v52 = vand.u32 4294901760, %v2617_v25  ;;  %v2921_v43 = vsub.f32 %v6698_v7, %v7500_v61  ;;  %v6763_v61 = vpack.c.bf16 %v2772_v56, %v2769_v2  ;;  %v6782_v56 = vld [vmem:[%s7449_s5 + $0x58] sm:$0xff] }
  0xdd   :  { %5296 = vmatpush3.bf16.msra.mxu0 %v6626_v37  ;;  %v6712_v16 = vpack.c.bf16 %v2908_v46, %v2901_v47  ;;  %v3033_v22 = vsub.f32 %v6668_v48, %v7501_v62  ;;  %v2914_v5 = vsub.f32 %v6688_v10, %v7499_v59  ;;  %v6729_v47 = vsub.f32 %v2616_v33, %v2832_v49  ;;  %v2618_v33 = vld [vmem:[%s7449_s5 + $0xd8] sm:$0xff]  ;;  %v6752_v59 = vld [vmem:[%s7449_s5 + $0x50] sm:$0xff] }
  0xde   :  { %5298 = vmatprep.subr.bf16.mxu0 %v6683_v24  ;;  %v6737_v41 = vsub.f32 %v6679_v35, %v2781_v4  ;;  %v2922_v62 = vand.u32 4294901760, %v2921_v43  ;;  %5268 = vmatpush3.bf16.msra.mxu1 %v6763_v61  ;;  %v2838_v38 = vand.u32 4294901760, %v2618_v33  ;;  %v6777_v2 = vsub.f32 %v2617_v25, %v2835_v52 }
  0xdf   :  { %7646 = vst [vmem:[#allocation27_spill] sm:$0xff] %v6712_v16  ;;  %7648 = vst [vmem:[#allocation29_spill] sm:$0xff] %v6729_v47  ;;  %v3034_v45 = vand.u32 4294901760, %v3033_v22  ;;  %v2915_v46 = vand.u32 4294901760, %v2914_v5  ;;  %v7505_v22 = vand.u32 4294901760, %v6727_v30  ;;  %v6756_v5 = vpack.c.bf16 %v2832_v49, %v2829_v21  ;;  %5270 = vmatprep.subr.bf16.mxu1 %v6739_v11 }
  0xe0   :  { %7649 = vst [vmem:[#allocation30_spill] sm:$0xff] %v6737_v41  ;;  %v7504_v53 = vand.u32 4294901760, %v6729_v47  ;;  %v7507_v40 = vand.u32 4294901760, %v6737_v41  ;;  %7653 = vst [vmem:[#allocation34_spill] sm:$0xff] %v6777_v2  ;;  %v7510_v21 = vand.u32 4294901760, %v6752_v59  ;;  %v6795_v12 = vsub.f32 %v2618_v33, %v2838_v38 }
  0xe1   :  { %5300 = vmatpush3.bf16.msra.mxu0 %v6712_v16  ;;  %v6754_v39 = vpack.c.bf16 %v3034_v45, %v3027_v9  ;;  %7651 = vst [vmem:[#allocation32_spill] sm:$0xff] %v6756_v5  ;;  %v3040_v57 = vsub.f32 %v6727_v30, %v7505_v22  ;;  %v6770_v9 = vsub.f32 %v6706_v55, %v2784_v27  ;;  %v7509_v22 = vand.u32 4294901760, %v6777_v2 }
  0xe2   :  { %v3047_v14 = vsub.f32 %v6729_v47, %v7504_v53  ;;  %v6785_v49 = vpack.c.bf16 %v2922_v62, %v2915_v46  ;;  %v2928_v45 = vsub.f32 %v6737_v41, %v7507_v40  ;;  %v6792_v53 = vpack.c.bf16 %v2838_v38, %v2835_v52  ;;  %7656 = vst [vmem:[#allocation37_spill] sm:$0xff] %v6795_v12  ;;  %v2619_v62 = vld [vmem:[%s7449_s5 + $0xe0] sm:$0xff] }
  0xe3   :  { %7650 = vst [vmem:[#allocation31_spill] sm:$0xff] %v6754_v39  ;;  %7652 = vst [vmem:[#allocation33_spill] sm:$0xff] %v6770_v9  ;;  %5302 = vmatprep.subr.bf16.mxu0 %v6754_v39  ;;  %v3041_v55 = vand.u32 4294901760, %v3040_v57  ;;  %v7508_v43 = vand.u32 4294901760, %v6770_v9  ;;  %v2620_v57 = vld [vmem:[%s7449_s5 + $0xe8] sm:$0xff]  ;;  %v6811_v33 = vpack.c.bf16 %v2778_v18, %v2775_v8  ;;  %v3054_v40 = vsub.f32 %v6777_v2, %v7509_v22 }
  0xe4   :  { %7654 = vst [vmem:[#allocation35_spill] sm:$0xff] %v6785_v49  ;;  %v3048_v25 = vand.u32 4294901760, %v3047_v14  ;;  %7655 = vst [vmem:[#allocation36_spill] sm:$0xff] %v6792_v53  ;;  %v2929_v46 = vand.u32 4294901760, %v2928_v45  ;;  %v2790_v14 = vand.u32 4294901760, %v6782_v56  ;;  %v7512_v45 = vand.u32 4294901760, %v6795_v12 }
  0xe5   :  { %5304 = vmatpush3.bf16.msra.mxu0 %v6785_v49  ;;  %v2935_v52 = vsub.f32 %v6770_v9, %v7508_v43  ;;  %v6823_v43 = vsub.f32 %v6752_v59, %v7510_v21  ;;  %5272 = vmatpush3.bf16.msra.mxu1 %v6811_v33  ;;  %v2841_v8 = vand.u32 4294901760, %v2619_v62  ;;  %v2844_v18 = vand.u32 4294901760, %v2620_v57  ;;  %v2604_v21 = vld [vmem:[%s7449_s5 + $0x68] sm:$0xff] }
  0xe6   :  { %v6814_v38 = vpack.c.bf16 %v3048_v25, %v3041_v55  ;;  %v6827_v58 = vsub.f32 %v6782_v56, %v2790_v14  ;;  %v6832_v55 = vld [vmem:[%s7449_s5 + $0x60] sm:$0xff]  ;;  %v3055_v25 = vand.u32 4294901760, %v3054_v40  ;;  %v3061_v22 = vsub.f32 %v6795_v12, %v7512_v45  ;;  %5274 = vmatprep.subr.bf16.mxu1 %v6756_v5  ;;  %v2621_v40 = vld [vmem:[%s7449_s5 + $0xf0] sm:$0xff] }
  0xe7   :  { %7658 = vst [vmem:[#allocation39_spill] sm:$0xff] %v6823_v43  ;;  %v2936_v51 = vand.u32 4294901760, %v2935_v52  ;;  %v6842_v56 = vpack.c.bf16 %v2784_v27, %v2781_v4  ;;  %v6853_v49 = vpack.c.bf16 %v2844_v18, %v2841_v8  ;;  %v6855_v52 = vsub.f32 %v2619_v62, %v2841_v8 }
  0xe8   :  { %7657 = vst [vmem:[#allocation38_spill] sm:$0xff] %v6814_v38  ;;  %7659 = vst [vmem:[#allocation40_spill] sm:$0xff] %v6827_v58  ;;  %5306 = vmatprep.subr.bf16.mxu0 %v6814_v38  ;;  %v7518_v45 = vand.u32 4294901760, %v6827_v58  ;;  %v3062_v39 = vand.u32 4294901760, %v3061_v22  ;;  %v7664_v35 = vand.u32 4294901760, %v6823_v43  ;;  %v6860_v27 = vsub.f32 %v2620_v57, %v2844_v18 }
  0xe9   :  { %7660 = vst [vmem:[#allocation41_spill] sm:$0xff] %v6842_v56  ;;  %v6850_v38 = vpack.c.bf16 %v2936_v51, %v2929_v46  ;;  %7662 = vst [vmem:[#allocation43_spill] sm:$0xff] %v6853_v49  ;;  %v2793_v16 = vand.u32 4294901760, %v6832_v55  ;;  %v2622_v46 = vld [vmem:[%s7449_s5 + $0xf8] sm:$0xff]  ;;  %v7521_v22 = vand.u32 4294901760, %v6855_v52  ;;  %5276 = vmatpush3.bf16.msra.mxu1 %v6842_v56  ;;  %v2796_v51 = vand.u32 4294901760, %v2604_v21 }
  0xea   :  { %7663 = vst [vmem:[#allocation44_spill] sm:$0xff] %v6855_v52  ;;  %v2942_v4 = vsub.f32 %v6823_v43, %v7664_v35  ;;  %7665 = vst [vmem:[#allocation45_spill] sm:$0xff] %v6860_v27  ;;  %v2949_v62 = vsub.f32 %v6827_v58, %v7518_v45  ;;  %v2847_v8 = vand.u32 4294901760, %v2621_v40  ;;  %v6872_v57 = vpack.c.bf16 %v3062_v39, %v3055_v25 }
  0xeb   :  { %7661 = vst [vmem:[#allocation42_spill] sm:$0xff] %v6850_v38  ;;  %5308 = vmatpush3.bf16.msra.mxu0 %v6850_v38  ;;  %v7524_v35 = vand.u32 4294901760, %v6860_v27  ;;  %v6876_v24 = vsub.f32 %v6832_v55, %v2793_v16  ;;  %5278 = vmatprep.subr.bf16.mxu1 %v6792_v53  ;;  %v3068_v45 = vsub.f32 %v6855_v52, %v7521_v22  ;;  %v2850_v15 = vand.u32 4294901760, %v2622_v46  ;;  %v2606_v22 = vld [vmem:[%s7449_s5 + $0x78] sm:$0xff] }
  0xec   :  { %7666 = vst [vmem:[#allocation46_spill] sm:$0xff] %v6872_v57  ;;  %v2943_v18 = vand.u32 4294901760, %v2942_v4  ;;  %v2950_v38 = vand.u32 4294901760, %v2949_v62  ;;  %v6882_v37 = vsub.f32 %v2604_v21, %v2796_v51  ;;  %5310 = vmatprep.subr.bf16.mxu0 %v6872_v57  ;;  %v6889_v55 = vsub.f32 %v2621_v40, %v2847_v8  ;;  %v2605_v21 = vld [vmem:[%s7449_s5 + $0x70] sm:$0xff] }
  0xed   :  { %7667 = vst [vmem:[#allocation47_spill] sm:$0xff] %v6876_v24  ;;  %v3075_v39 = vsub.f32 %v6860_v27, %v7524_v35  ;;  %v7670_v4 = vand.u32 4294901760, %v6752_v59  ;;  %v3069_v20 = vand.u32 4294901760, %v3068_v45  ;;  %v7673_v40 = vand.u32 4294901760, %v6876_v24 }
  0xee   :  { %7668 = vst [vmem:[#allocation48_spill] sm:$0xff] %v6882_v37  ;;  %7669 = vst [vmem:[#allocation49_spill] sm:$0xff] %v6889_v55  ;;  %v6901_v57 = vpack.c.bf16 %v2950_v38, %v2943_v18  ;;  %v7533_v35 = vand.u32 4294901760, %v6882_v37  ;;  %v2799_v45 = vand.u32 4294901760, %v2605_v21  ;;  %v2802_v18 = vand.u32 4294901760, %v2606_v22 }
  0xef   :  { %v6893_v62 = vpack.c.bf16 %v2790_v14, %v7670_v4  ;;  %v3076_v25 = vand.u32 4294901760, %v3075_v39  ;;  %v2956_v59 = vsub.f32 %v6876_v24, %v7673_v40  ;;  %v7536_v14 = vand.u32 4294901760, %v6889_v55 }
  0xf0   :  { %7672 = vst [vmem:[#allocation51_spill] sm:$0xff] %v6901_v57  ;;  %v6908_v4 = vsub.f32 %v2622_v46, %v2850_v15  ;;  %5312 = vmatpush3.bf16.msra.mxu0 %v6901_v57  ;;  %v2963_v38 = vsub.f32 %v6882_v37, %v7533_v35  ;;  %v6922_v53 = vpack.c.bf16 %v2850_v15, %v2847_v8 }
  0xf1   :  { %7671 = vst [vmem:[#allocation50_spill] sm:$0xff] %v6893_v62  ;;  %5280 = vmatpush3.bf16.msra.mxu1 %v6893_v62  ;;  %v6916_v39 = vpack.c.bf16 %v3076_v25, %v3069_v20  ;;  %v2957_v0 = vand.u32 4294901760, %v2956_v59  ;;  %v3082_v46 = vsub.f32 %v6889_v55, %v7536_v14  ;;  %v2968_v57 = vsub.f32 %v2605_v21, %v2799_v45 }
  0xf2   :  { %7674 = vst [vmem:[#allocation52_spill] sm:$0xff] %v6908_v4  ;;  %5282 = vmatprep.subr.bf16.mxu1 %v6853_v49  ;;  %v7539_v40 = vand.u32 4294901760, %v6908_v4  ;;  %v2964_v62 = vand.u32 4294901760, %v2963_v38  ;;  %v2975_v56 = vsub.f32 %v2606_v22, %v2802_v18  ;;  %v6928_v25 = vpack.c.bf16 %v2796_v51, %v2793_v16 }
  0xf3   :  { %7675 = vst [vmem:[#allocation53_spill] sm:$0xff] %v6916_v39  ;;  %5314 = vmatprep.subr.bf16.mxu0 %v6916_v39  ;;  %v3083_v35 = vand.u32 4294901760, %v3082_v46  ;;  %v2969_v49 = vand.u32 4294901760, %v2968_v57  ;;  %v6935_v8 = vpack.c.bf16 %v2802_v18, %v2799_v45  ;;  %v6945_v51 = vpack.c.bf16 %v6488_v31, %v6486_v3 }
  0xf4   :  { %v3089_v20 = vsub.f32 %v6908_v4, %v7539_v40  ;;  %v6930_v59 = vpack.c.bf16 %v2964_v62, %v2957_v0  ;;  %v2976_v14 = vand.u32 4294901760, %v2975_v56  ;;  %v6949_v62 = vpack.c.bf16 %v6498_v34, %v6493_v1 }
  0xf5   :  { %5284 = vmatpush3.bf16.msra.mxu1 %v6928_v25  ;;  %v2970_v15 = vsub.f32 %v2968_v57, %v2969_v49  ;;  %7677 = vst [vmem:[#allocation55_spill] sm:$0xff] %v6935_v8  ;;  %7680 = vst [vmem:[#allocation58_spill] sm:$0xff] %v6945_v51  ;;  %v6998_v40 = vpack.c.bf16 %v6860_v27, %v6855_v52  ;;  %v7008_v39 = vpack.c.bf16 %v2975_v56, %v2968_v57  ;;  %v39_v52 = vld [vmem:[%s7445_s1] sm:$0x3f] }
  0xf6   :  { %7676 = vst [vmem:[#allocation54_spill] sm:$0xff] %v6930_v59  ;;  %v3090_v5 = vand.u32 4294901760, %v3089_v20  ;;  %5316 = vmatpush3.bf16.msra.mxu0 %v6930_v59  ;;  %v2977_v22 = vsub.f32 %v2975_v56, %v2976_v14  ;;  %5286 = vmatprep.subr.bf16.mxu1 %v6922_v53  ;;  %v6965_v20 = vpack.c.bf16 %v6600_v44, %v6598_v26 }
  0xf7   :  { %v2971_v38 = vand.u32 4294901760, %v2970_v15  ;;  %7681 = vst [vmem:[#allocation59_spill] sm:$0xff] %v6998_v40  ;;  %v7006_v59 = vpack.c.bf16 %v6908_v4, %v6889_v55  ;;  %7684 = vst [vmem:[#allocation62_spill] sm:$0xff] %v7008_v39 }
  0xf8   :  { %v6937_v21 = vpack.c.bf16 %v3090_v5, %v3083_v35  ;;  %v2978_v16 = vand.u32 4294901760, %v2977_v22  ;;  %v6956_v5 = vpack.c.bf16 %v6538_v29, %v6535_v42  ;;  %v6960_v35 = vpack.c.bf16 %v6554_v13, %v6549_v60 }
  0xf9   :  { %5288 = vmatpush3.bf16.msra.mxu1 %v6935_v8  ;;  %v6970_v22 = vpack.c.bf16 %v6631_v28, %v6615_v23  ;;  %7683 = vst [vmem:[#allocation61_spill] sm:$0xff] %v7006_v59 }
  0xfa   :  { %7678 = vst [vmem:[#allocation56_spill] sm:$0xff] %v6937_v21  ;;  %5318 = vmatprep.subr.bf16.mxu0 %v6937_v21  ;;  %v6941_v0 = vpack.c.bf16 %v2978_v16, %v2971_v38  ;;  %5322 = vmatprep.subr.bf16.mxu1 %v6945_v51  ;;  %v6974_v38 = vpack.c.bf16 %v6668_v48, %v6651_v36 }
  0xfb   :  { %v6978_v16 = vpack.c.bf16 %v6698_v7, %v6688_v10 }
  0xfc   :  { %7679 = vst [vmem:[#allocation57_spill] sm:$0xff] %v6941_v0  ;;  %5320 = vmatpush3.bf16.msra.mxu0 %v6941_v0  ;;  %v7002_v0 = vpack.c.bf16 %v6882_v37, %v6876_v24 }
  0xfd   :  { %5354 = vmatprep.subr.bf16.mxu0 %v6564_v17 }
  0xfe   :  { %7682 = vst [vmem:[#allocation60_spill] sm:$0xff] %v7002_v0 }
 0x100   :  { %v6464_v32 = vpop.f32.mrb[0].mxu1 }
 0x101   :  { %v6466_v6 = vpop.f32.mrb[1].mxu1 }
 0x141   :  { %v722_v45 = vpop.f32.mrb[0].mxu0 }
 0x142   :  { %v5641_v18 = vadd.f32 %v722_v45, %v6464_v32  ;;  %v724_v46 = vpop.f32.mrb[1].mxu0  ;;  %v6982_v32 = vpack.c.bf16 %v6729_v47, %v6727_v30  ;;  %v6986_v45 = vpack.c.bf16 %v6770_v9, %v6737_v41 }
 0x143   :  { %v5642_v15 = vadd.f32 %v724_v46, %v6466_v6  ;;  %v6990_v6 = vpack.c.bf16 %v6795_v12, %v6777_v2  ;;  %v6994_v46 = vpack.c.bf16 %v6827_v58, %v6823_v43  ;;  %v7010_v12 = vpack.c.bf16 %v2976_v14, %v2969_v49 }
 0x144   :  { %v1970_v58 = vlaneseq }
 0x145   :  { %7685 = vst [vmem:[#allocation63_spill] sm:$0xff] %v7010_v12 }
 0x146   :  { %v1971_v43 = vshrl.u32 %v1970_v58, 7 }
 0x148   :  { %v1972_v27 = vsub.s32 0, %v1971_v43  ;;  %v1976_v37 = vsub.s32 1, %v1971_v43  ;;  %v1980_v24 = vsub.s32 2, %v1971_v43  ;;  %v1984_v41 = vsub.s32 3, %v1971_v43 }
 0x149   :  { %v1988_v55 = vsub.s32 4, %v1971_v43  ;;  %v1992_v57 = vsub.s32 5, %v1971_v43 }
 0x14a   :  { %v1973_v4 = vrot.slane %v39_v52, %v1972_v27  ;;  %v1977_v56 = vrot.slane %v39_v52, %v1976_v37  ;;  %v1981_v49 = vrot.slane %v39_v52, %v1980_v24  ;;  %v1985_v14 = vrot.slane %v39_v52, %v1984_v41 }
 0x14b   :  { %v1989_v10 = vrot.slane %v39_v52, %v1988_v55  ;;  %v1993_v36 = vrot.slane %v39_v52, %v1992_v57 }
 0x14c   :  { %v7019_v7 = vadd.f32 %v5641_v18, %v1973_v4  ;;  %v7021_v48 = vadd.f32 %v5642_v15, %v1977_v56 }
 0x14e   :  { %v2667_v37 = vrot.slane %v7019_v7, 4  ;;  %v2668_v4 = vrot.slane %v7021_v48, 4 }
 0x155   :  { %v1343_v51 = vpop.f32.mrb[2].mxu1 }
 0x156   :  { %v1345_v21 = vpop.f32.mrb[3].mxu1  ;;  %v7023_v28 = vadd.f32 %v1981_v49, %v1343_v51 }
 0x157   :  { %v7025_v23 = vadd.f32 %v1985_v14, %v1345_v21 }
 0x158   :  { %v2627_v21 = vrot.slane %v7023_v28, 7  ;;  %v2673_v18 = vrot.slane %v7023_v28, 3 }
 0x159   :  { %v2628_v56 = vrot.slane %v7025_v23, 7 }
 0x189   :  { %v2572_v2 = vpop.f32.mrb[4].mxu1 }
 0x18a   :  { %v2574_v9 = vpop.f32.mrb[5].mxu1 }
 0x18d   :  { %v2579_v47 = vpop.f32.mrb[6].mxu1 }
 0x18e   :  { %v2581_v30 = vpop.f32.mrb[7].mxu1 }
 0x191   :  { %v7015_v12 = vpop.f32.mrb[8].mxu1 }
 0x192   :  { %v7017_v58 = vpop.f32.mrb[9].mxu1 }
 0x196   :  { %v1964_v27 = vpop.f32.mrb[2].mxu0 }
 0x197   :  { %v7030_v43 = vadd.f32 %v1989_v10, %v1964_v27  ;;  %v1966_v44 = vpop.f32.mrb[3].mxu0  ;;  %v2674_v10 = vrot.slane %v7025_v23, 3 }
 0x198   :  { %v7035_v51 = vadd.f32 %v1993_v36, %v1966_v44 }
 0x199   :  { %v2643_v49 = vrot.slane %v7030_v43, 6  ;;  %v2687_v14 = vrot.slane %v7030_v43, 2 }
 0x19a   :  { %v2101_v27 = vpop.f32.mrb[4].mxu0  ;;  %v2644_v41 = vrot.slane %v7035_v51, 6  ;;  %v2688_v15 = vrot.slane %v7035_v51, 2 }
 0x19b   :  { %v5643_v24 = vadd.f32 %v2572_v2, %v2101_v27  ;;  %v2103_v52 = vpop.f32.mrb[5].mxu0 }
 0x19c   :  { %v5644_v57 = vadd.f32 %v2574_v9, %v2103_v52 }
 0x19d   :  { %v2623_v13 = vmul.f32 %v5643_v24, %v7019_v7  ;;  %v2631_v60 = vmul.f32 %v5643_v24, %v2627_v21  ;;  %v2647_v29 = vmul.f32 %v5643_v24, %v2643_v49  ;;  %v2671_v42 = vmul.f32 %v5643_v24, %v2667_v37 }
 0x19e   :  { %v2677_v34 = vmul.f32 %v5643_v24, %v2673_v18  ;;  %v2691_v44 = vmul.f32 %v5643_v24, %v2687_v14  ;;  %v2112_v1 = vpop.f32.mrb[6].mxu0  ;;  %v2624_v36 = vmul.f32 %v5644_v57, %v7021_v48  ;;  %v2632_v39 = vmul.f32 %v5644_v57, %v2628_v56 }
 0x19f   :  { %v2635_v2 = vrot.slane %v2631_v60, 1  ;;  %v7053_v27 = vadd.f32 %v2579_v47, %v2112_v1  ;;  %v2114_v31 = vpop.f32.mrb[7].mxu0  ;;  %v2648_v3 = vmul.f32 %v5644_v57, %v2644_v41  ;;  %v2651_v55 = vrot.slane %v2647_v29, 2 }
 0x1a0   :  { %v2681_v59 = vrot.slane %v2677_v34, 1  ;;  %v7055_v26 = vadd.f32 %v2581_v30, %v2114_v31  ;;  %v2636_v9 = vrot.slane %v2632_v39, 1  ;;  %v2659_v52 = vrot.slane %v5643_v24, 3 }
 0x1a1   :  { %v2703_v37 = vmul.f32 %v7053_v27, %v7019_v7  ;;  %v2705_v18 = vmul.f32 %v7053_v27, %v2627_v21  ;;  %v2639_v14 = vadd.f32 %v2635_v2, %v2623_v13  ;;  %v2652_v0 = vrot.slane %v2648_v3, 2 }
 0x1a2   :  { %v2123_v17 = vpop.f32.mrb[8].mxu0  ;;  %v2640_v60 = vadd.f32 %v2636_v9, %v2624_v36  ;;  %v2660_v1 = vrot.slane %v5644_v57, 3  ;;  %v2672_v47 = vmul.f32 %v5644_v57, %v2668_v4  ;;  %v2678_v40 = vmul.f32 %v5644_v57, %v2674_v10 }
 0x1a3   :  { %v7061_v29 = vadd.f32 %v7015_v12, %v2123_v17  ;;  %v2125_v31 = vpop.f32.mrb[9].mxu0  ;;  %v2655_v34 = vadd.f32 %v2651_v55, %v2639_v14  ;;  %v2685_v30 = vadd.f32 %v2681_v59, %v2671_v42  ;;  %v2692_v39 = vmul.f32 %v5644_v57, %v2688_v15 }
 0x1a4   :  { %v7064_v24 = vadd.f32 %v7017_v58, %v2125_v31  ;;  %v2656_v8 = vadd.f32 %v2652_v0, %v2640_v60  ;;  %v2682_v21 = vrot.slane %v2678_v40, 1  ;;  %v2695_v13 = vrot.slane %v2691_v44, 2 }
 0x1a5   :  { %v2663_v3 = vadd.f32 %v2659_v52, %v2655_v34  ;;  %v2696_v2 = vrot.slane %v2692_v39, 2  ;;  %v2704_v36 = vmul.f32 %v7055_v26, %v7021_v48  ;;  %v2706_v4 = vmul.f32 %v7055_v26, %v2628_v56 }
 0x1a6   :  { %v2664_v10 = vadd.f32 %v2660_v1, %v2656_v8  ;;  %v2686_v12 = vadd.f32 %v2682_v21, %v2672_v47  ;;  %v2699_v17 = vadd.f32 %v2695_v13, %v2685_v30  ;;  %v2709_v9 = vrot.slane %v2705_v18, 1 }
 0x1a7   :  { %v2710_v42 = vrot.slane %v2706_v4, 1  ;;  %v2715_v59 = vmul.f32 %v7053_v27, %v2643_v49  ;;  %v2716_v58 = vmul.f32 %v7055_v26, %v2644_v41  ;;  %v2727_v40 = vrot.slane %v7053_v27, 3 }
 0x1a8   :  { %v2700_v0 = vadd.f32 %v2696_v2, %v2686_v12  ;;  %v2701_v55 = vadd.f32 %v2699_v17, %v2659_v52  ;;  %v2713_v15 = vadd.f32 %v2709_v9, %v2703_v37  ;;  %v2728_v57 = vrot.slane %v7055_v26, 3 }
 0x1a9   :  { %v2714_v44 = vadd.f32 %v2710_v42, %v2704_v36  ;;  %v2719_v14 = vrot.slane %v2715_v59, 2  ;;  %v2720_v56 = vrot.slane %v2716_v58, 2  ;;  %v7686_v8 = vrot.slane %v7021_v48, 5 }
 0x1aa   :  { %v2702_v60 = vadd.f32 %v2700_v0, %v2660_v1  ;;  %v2735_v47 = vrot.slane %v2701_v55, 3  ;;  %v7687_v49 = vrot.slane %v7025_v23, 4  ;;  %v7688_v31 = vrot.slane %v7035_v51, 3 }
 0x1ab   :  { %v3625_v18 = vmul.f32 %v7055_v26, %v7686_v8  ;;  %v2723_v37 = vadd.f32 %v2719_v14, %v2713_v15  ;;  %v2724_v34 = vadd.f32 %v2720_v56, %v2714_v44  ;;  %v7689_v30 = vrot.slane %v7021_v48, 1 }
 0x1ac   :  { %v3631_v41 = vmul.f32 %v7055_v26, %v7687_v49  ;;  %v3645_v52 = vmul.f32 %v7055_v26, %v7688_v31  ;;  %v3663_v21 = vmul.f32 %v7064_v24, %v7025_v23  ;;  %v2736_v13 = vrot.slane %v2702_v60, 3 }
 0x1ad   :  { %v3661_v39 = vmul.f32 %v7064_v24, %v7689_v30  ;;  %v2746_v1 = vsel %vm2745_vm4, %v2663_v3, %v2735_v47  ;;  %v2731_v4 = vadd.f32 %v2727_v40, %v2723_v37  ;;  %v2732_v12 = vadd.f32 %v2728_v57, %v2724_v34 }
 0x1ae   :  { %v3635_v2 = vrot.slane %v3631_v41, 1  ;;  %v3649_v36 = vrot.slane %v3645_v52, 2  ;;  %v3667_v17 = vrot.slane %v3663_v21, 1  ;;  %v7690_v26 = vrot.slane %v7035_v51, 7 }
 0x1af   :  { %v2747_v42 = vsel %vm2745_vm4, %v2664_v10, %v2736_v13  ;;  %v3689_v58 = vrot.slane %v7064_v24, 3  ;;  %v7691_v0 = vmov %v7686_v8  ;;  %v2741_v55 = vrot.slane %v2731_v4, 6 }
 0x1b0   :  { %v3677_v9 = vmul.f32 %v7064_v24, %v7690_v26  ;;  %v3639_v59 = vadd.f32 %v3635_v2, %v3625_v18  ;;  %v3695_v3 = vmul.f32 %v7064_v24, %v7691_v0  ;;  %v2742_v15 = vrot.slane %v2732_v12, 6 }
 0x1b1   :  { %v3671_v44 = vadd.f32 %v3667_v17, %v3661_v39  ;;  %v7692_v8 = vmov %v7687_v49  ;;  %v7693_v47 = vmov %v7688_v31  ;;  %v7694_v18 = vrot.slane %v7019_v7, 5 }
 0x1b2   :  { %v3681_v14 = vrot.slane %v3677_v9, 2  ;;  %v3653_v56 = vadd.f32 %v3649_v36, %v3639_v59  ;;  %v3697_v60 = vmul.f32 %v7064_v24, %v7692_v8  ;;  %v3707_v10 = vmul.f32 %v7064_v24, %v7693_v47 }
 0x1b3   :  { %v3624_v49 = vmul.f32 %v7053_v27, %v7694_v18  ;;  %v2749_v48 = vsel %vm2748_vm5, %v2746_v1, %v2741_v55  ;;  %v2750_v41 = vsel %vm2748_vm5, %v2747_v42, %v2742_v15  ;;  %v7695_v52 = vrot.slane %v7023_v28, 4 }
 0x1b4   :  { %v3685_v31 = vadd.f32 %v3681_v14, %v3671_v44  ;;  %v2753_v23 = vcombine.low %v2749_v48, %v2750_v41  ;;  %v7112_v34 = vand.u32 4294901760, %v2750_v41  ;;  %v7114_v30 = vand.u32 4294901760, %v2749_v48 }
 0x1b5   :  { %v3630_v37 = vmul.f32 %v7053_v27, %v7695_v52  ;;  %v3655_v51 = vadd.f32 %v3653_v56, %v2728_v57  ;;  %v3701_v39 = vrot.slane %v3697_v60, 1  ;;  %v3711_v21 = vrot.slane %v3707_v10, 2 }
 0x1b6   :  { %v3693_v24 = vadd.f32 %v3689_v58, %v3685_v31  ;;  %2755 = vst [vmem:[%s7450_s6] sm:$0x77] %v2753_v23  ;;  %3093 = vmatprep.mubr.f32.mxu0 %v7112_v34  ;;  %v2853_v1 = vsub.f32 %v2750_v41, %v7112_v34  ;;  %v7122_v2 = vsub.f32 %v2749_v48, %v7114_v30  ;;  %v7696_v4 = vrot.slane %v7030_v43, 3 }
 0x1b7   :  { %v3634_v13 = vrot.slane %v3630_v37, 1  ;;  %v3721_v36 = vrot.slane %v3655_v51, 4  ;;  %3095 = vmatmul.mubr.f32.vlgmr.msra.gmra.mrb[10].mxu0 %v7114_v30  ;;  %v3705_v12 = vadd.f32 %v3701_v39, %v3695_v3  ;;  %v7697_v9 = vrot.slane %v7019_v7, 1 }
 0x1b8   :  { %v3644_v57 = vmul.f32 %v7053_v27, %v7696_v4  ;;  %v3727_v17 = vrot.slane %v3693_v24, 7  ;;  %5356 = vmatpush3.bf16.msra.mxu0 %v6662_v50  ;;  %v2854_v59 = vand.u32 4294901760, %v2853_v1  ;;  %v2860_v0 = vand.u32 4294901760, %v7122_v2 }
 0x1b9   :  { %v3638_v26 = vadd.f32 %v3634_v13, %v3624_v49  ;;  %v3660_v42 = vmul.f32 %v7061_v29, %v7697_v9  ;;  %v3662_v15 = vmul.f32 %v7061_v29, %v7023_v28  ;;  %5358 = vmatprep.subr.bf16.mxu0 %v6639_v54  ;;  %v3715_v44 = vadd.f32 %v3711_v21, %v3705_v12 }
 0x1ba   :  { %v3648_v55 = vrot.slane %v3644_v57, 2  ;;  %v3737_v3 = vsel %vm2745_vm4, %v3721_v36, %v3727_v17  ;;  %v7698_v14 = vrot.slane %v7030_v43, 7  ;;  %3337 = vmatprep.mubr.f32.mxu0 %v2854_v59  ;;  %v2855_v8 = vsub.f32 %v2853_v1, %v2854_v59 }
 0x1bb   :  { %v2861_v60 = vsub.f32 %v7122_v2, %v2860_v0  ;;  %v3666_v10 = vrot.slane %v3662_v15, 1  ;;  %v3717_v18 = vadd.f32 %v3715_v44, %v3689_v58  ;;  %v7699_v49 = vrot.slane %v7019_v7, 5  ;;  %v7705_v15 = vld [vmem:[#allocation50_spill] sm:$0xff]  ;;  %v7706_v44 = vld [vmem:[#allocation43_spill] sm:$0xff] }
 0x1bc   :  { %v3676_v56 = vmul.f32 %v7061_v29, %v7698_v14  ;;  %v3652_v47 = vadd.f32 %v3648_v55, %v3638_v26  ;;  %v7700_v41 = vmov %v7695_v52  ;;  %5360 = vmatpush3.bf16.msra.mxu0 %v6721_v63  ;;  %v2856_v52 = vand.u32 4294901760, %v2855_v8  ;;  %v7702_v26 = vld [vmem:[#allocation32_spill] sm:$0xff]  ;;  %v7708_v14 = vld [vmem:[#allocation59_spill] sm:$0xff] }
 0x1bd   :  { %v3694_v48 = vmul.f32 %v7061_v29, %v7699_v49  ;;  %v3696_v31 = vmul.f32 %v7061_v29, %v7700_v41  ;;  %v3670_v23 = vadd.f32 %v3666_v10, %v3660_v42  ;;  %5362 = vmatprep.subr.bf16.mxu0 %v6681_v19  ;;  %v2862_v24 = vand.u32 4294901760, %v2861_v60  ;;  %v7703_v42 = vld [vmem:[#allocation41_spill] sm:$0xff]  ;;  %v7704_v55 = vld [vmem:[#allocation36_spill] sm:$0xff]  ;;  %v7716_v41 = vld [vmem:[#allocation62_spill] sm:$0xff] }
 0x1be   :  { %v3654_v37 = vadd.f32 %v3652_v47, %v2727_v40  ;;  %v3680_v51 = vrot.slane %v3676_v56, 2  ;;  %v3733_v58 = vrot.slane %v3717_v18, 2  ;;  %v7701_v7 = vmov %v7696_v4  ;;  %2857 = vmatprep.mubr.f32.mxu1 %v2856_v52  ;;  %v7709_v56 = vld [vmem:[#allocation13_spill] sm:$0xff]  ;;  %v7710_v8 = vld [vmem:[#allocation60_spill] sm:$0xff]  ;;  %v7714_v18 = vld [vmem:[#allocation6_spill] sm:$0xff] }
 0x1bf   :  { %v3700_v39 = vrot.slane %v3696_v31, 1  ;;  %v3706_v21 = vmul.f32 %v7061_v29, %v7701_v7  ;;  %v3688_v13 = vrot.slane %v7061_v29, 3  ;;  %2863 = vmatmul.mubr.f32.vlgmr.msra.gmra.mrb[10].mxu1 %v2862_v24  ;;  %v7711_v60 = vld [vmem:[#allocation61_spill] sm:$0xff]  ;;  %v7715_v49 = vand.u32 4294901760, %v7714_v18  ;;  %v7719_v52 = vld [vmem:[#allocation8_spill] sm:$0xff]  ;;  %v7739_v18 = vld [vmem:[#allocation23_spill] sm:$0xff] }
 0x1c0   :  { %v3684_v28 = vadd.f32 %v3680_v51, %v3670_v23  ;;  %v7158_v36 = vsel %vm2748_vm5, %v3737_v3, %v3733_v58  ;;  %5324 = vmatpush3.bf16.msra.mxu1 %v6949_v62  ;;  %5364 = vmatpush3.bf16.msra.mxu0 %v6763_v61  ;;  %v3720_v57 = vrot.slane %v3654_v37, 4  ;;  %v7707_v3 = vld [vmem:[#allocation55_spill] sm:$0xff]  ;;  %v7712_v47 = vld [vmem:[#allocation5_spill] sm:$0xff]  ;;  %v7720_v37 = vand.u32 4294901760, %v7719_v52  ;;  %v7723_v58 = vld [vmem:[#allocation10_spill] sm:$0xff] }
 0x1c1   :  { %v3704_v27 = vadd.f32 %v3700_v39, %v3694_v48  ;;  %v3710_v40 = vrot.slane %v3706_v21, 2  ;;  %3230 = vmatprep.mubr.f32.mxu1 %v2853_v1  ;;  %5326 = vmatprep.subr.bf16.mxu1 %v6956_v5  ;;  %v7713_v10 = vand.u32 4294901760, %v7712_v47  ;;  %v7721_v51 = vld [vmem:[#allocation9_spill] sm:$0xff]  ;;  %v7724_v39 = vand.u32 4294901760, %v7723_v58  ;;  %v7725_v21 = vld [vmem:[#allocation11_spill] sm:$0xff]  ;;  %v7737_v47 = vld [vmem:[#allocation22_spill] sm:$0xff] }
 0x1c2   :  { %v3692_v4 = vadd.f32 %v3688_v13, %v3684_v28  ;;  %5366 = vmatprep.subr.bf16.mxu0 %v6739_v11  ;;  %v7722_v24 = vand.u32 4294901760, %v7721_v51  ;;  %v7726_v28 = vand.u32 4294901760, %v7725_v21  ;;  %v7745_v58 = vld [vmem:[#allocation28_spill] sm:$0xff]  ;;  %v7747_v21 = vld [vmem:[#allocation29_spill] sm:$0xff] }
 0x1c3   :  { %v3714_v43 = vadd.f32 %v3710_v40, %v3704_v27  ;;  %v7203_v48 = vpack.c.bf16 %v7715_v49, %v7713_v10  ;;  %v7738_v10 = vand.u32 4294901760, %v7737_v47  ;;  %v7740_v49 = vand.u32 4294901760, %v7739_v18  ;;  %v7757_v18 = vld [vmem:[#allocation39_spill] sm:$0xff] }
 0x1c4   :  { %v3726_v12 = vrot.slane %v3692_v4, 7  ;;  %5328 = vmatpush3.bf16.msra.mxu1 %v6960_v35  ;;  %5368 = vmatpush3.bf16.msra.mxu0 %v6811_v33  ;;  %v7220_v7 = vpack.c.bf16 %v7724_v39, %v7722_v24  ;;  %v7729_v4 = vld [vmem:[#allocation16_spill] sm:$0xff]  ;;  %v7746_v39 = vand.u32 4294901760, %v7745_v58 }
 0x1c5   :  { %v3716_v29 = vadd.f32 %v3714_v43, %v3688_v13  ;;  %5330 = vmatprep.subr.bf16.mxu1 %v6965_v20  ;;  %5370 = vmatprep.subr.bf16.mxu0 %v7702_v26  ;;  %v7727_v13 = vld [vmem:[#allocation12_spill] sm:$0xff]  ;;  %v7730_v43 = vand.u32 4294901760, %v7729_v4 }
 0x1c6   :  { %v3736_v17 = vsel %vm2745_vm4, %v3720_v57, %v3726_v12  ;;  %v7728_v27 = vand.u32 4294901760, %v7727_v13  ;;  %v7731_v57 = vld [vmem:[#allocation17_spill] sm:$0xff] }
 0x1c7   :  { %v3732_v9 = vrot.slane %v3716_v29, 2  ;;  %v7732_v12 = vand.u32 4294901760, %v7731_v57 }
 0x1c8   :  { %5332 = vmatpush3.bf16.msra.mxu1 %v6970_v22  ;;  %5372 = vmatpush3.bf16.msra.mxu0 %v7703_v42  ;;  %v7229_v40 = vpack.c.bf16 %v7728_v27, %v7726_v28  ;;  %v7748_v28 = vand.u32 4294901760, %v7747_v21  ;;  %v7749_v27 = vld [vmem:[#allocation30_spill] sm:$0xff] }
 0x1c9   :  { %v7170_v1 = vsel %vm2748_vm5, %v3736_v17, %v3732_v9  ;;  %5334 = vmatprep.subr.bf16.mxu1 %v6974_v38  ;;  %5374 = vmatprep.subr.bf16.mxu0 %v7704_v55  ;;  %v7237_v29 = vpack.c.bf16 %v7732_v12, %v7730_v43  ;;  %v7735_v17 = vld [vmem:[#allocation21_spill] sm:$0xff]  ;;  %v7750_v4 = vand.u32 4294901760, %v7749_v27 }
 0x1ca   :  { %v3742_v59 = vcombine.low %v7170_v1, %v7158_v36  ;;  %v7736_v9 = vand.u32 4294901760, %v7735_v17  ;;  %v7269_v13 = vpack.c.bf16 %v7748_v28, %v7746_v39  ;;  %v7751_v43 = vld [vmem:[#allocation33_spill] sm:$0xff] }
 0x1cb   :  { %v7752_v57 = vand.u32 4294901760, %v7751_v43  ;;  %v7755_v17 = vld [vmem:[#allocation37_spill] sm:$0xff] }
 0x1cc   :  { %4619 = vst [vmem:[%s7450_s6 + $0x8] sm:$0x77] %v3742_v59  ;;  %5336 = vmatpush3.bf16.msra.mxu1 %v6978_v16  ;;  %5376 = vmatpush3.bf16.msra.mxu0 %v7705_v15  ;;  %v7763_v39 = vld [vmem:[#allocation45_spill] sm:$0xff] }
 0x1cd   :  { %5338 = vmatprep.subr.bf16.mxu1 %v6982_v32  ;;  %5378 = vmatprep.subr.bf16.mxu0 %v7706_v44  ;;  %v7277_v12 = vpack.c.bf16 %v7752_v57, %v7750_v4  ;;  %v7764_v21 = vand.u32 4294901760, %v7763_v39  ;;  %v7765_v4 = vld [vmem:[#allocation47_spill] sm:$0xff]  ;;  %v7767_v57 = vld [vmem:[#allocation48_spill] sm:$0xff] }
 0x1ce   :  { %v7766_v43 = vand.u32 4294901760, %v7765_v4  ;;  %v7777_v4 = vld [vmem:[#allocation20_spill] sm:$0xff] }
 0x1d0   :  { %5340 = vmatpush3.bf16.msra.mxu1 %v6986_v45  ;;  %5380 = vmatpush3.bf16.msra.mxu0 %v6928_v25 }
 0x1d1   :  { %5342 = vmatprep.subr.bf16.mxu1 %v6990_v6  ;;  %5382 = vmatprep.subr.bf16.mxu0 %v6922_v53 }
 0x1d4   :  { %5344 = vmatpush3.bf16.msra.mxu1 %v6994_v46  ;;  %5384 = vmatpush3.bf16.msra.mxu0 %v7707_v3 }
 0x1d5   :  { %5346 = vmatprep.subr.bf16.mxu1 %v7708_v14  ;;  %5418 = vmatprep.subr.bf16.mxu0 %v7709_v56 }
 0x1d7   :  { %3341 = vmatmul.mubr.f32.vlgmr.msra.gmra.mrb[12].mxu0 %v2860_v0  ;;  %v7717_v0 = vld [vmem:[#allocation7_spill] sm:$0xff] }
 0x1d8   :  { %5348 = vmatpush3.bf16.msra.mxu1 %v7710_v8  ;;  %5420 = vmatpush3.bf16.msra.mxu0 %v6662_v50  ;;  %v7718_v31 = vand.u32 4294901760, %v7717_v0  ;;  %v7253_v0 = vpack.c.bf16 %v7740_v49, %v7738_v10  ;;  %v7289_v10 = vand.u32 4294901760, %v7158_v36  ;;  %v7758_v49 = vand.u32 4294901760, %v7757_v18 }
 0x1d9   :  { %3611 = vmatprep.mubr.f32.mxu0 %v7112_v34  ;;  %5350 = vmatprep.subr.bf16.mxu1 %v7711_v60 }
 0x1da   :  { %5422 = vmatprep.subr.bf16.mxu0 %v6639_v54  ;;  %v7212_v23 = vpack.c.bf16 %v7720_v37, %v7718_v31  ;;  %v7741_v31 = vld [vmem:[#allocation25_spill] sm:$0xff]  ;;  %v7743_v37 = vld [vmem:[#allocation26_spill] sm:$0xff]  ;;  %v3843_v27 = vsub.f32 %v7158_v36, %v7289_v10 }
 0x1db   :  { %v7742_v52 = vand.u32 4294901760, %v7741_v31  ;;  %v7744_v51 = vand.u32 4294901760, %v7743_v37  ;;  %v7759_v31 = vld [vmem:[#allocation40_spill] sm:$0xff] }
 0x1dc   :  { %5352 = vmatpush3.bf16.msra.mxu1 %v7716_v41  ;;  %5424 = vmatpush3.bf16.msra.mxu0 %v6721_v63  ;;  %v3844_v36 = vand.u32 4294901760, %v3843_v27 }
 0x1dd   :  { %5386 = vmatprep.subr.bf16.mxu1 %v7203_v48  ;;  %5426 = vmatprep.subr.bf16.mxu0 %v6681_v19  ;;  %v7261_v24 = vpack.c.bf16 %v7744_v51, %v7742_v52  ;;  %v7760_v52 = vand.u32 4294901760, %v7759_v31  ;;  %v7761_v51 = vld [vmem:[#allocation44_spill] sm:$0xff] }
 0x1de   :  { %v7762_v58 = vand.u32 4294901760, %v7761_v51  ;;  %v7774_v51 = vld [vmem:[#allocation15_spill] sm:$0xff]  ;;  %v3845_v39 = vsub.f32 %v3843_v27, %v3844_v36 }
 0x1df   :  { %3233 = vmatmul.mubr.f32.vlgmr.msra.gmra.mrb[12].mxu1 %v7122_v2  ;;  %v7296_v37 = vpack.c.bf16 %v7760_v52, %v7758_v49  ;;  %v7772_v49 = vld [vmem:[#allocation52_spill] sm:$0xff] }
 0x1e0   :  { %5388 = vmatpush3.bf16.msra.mxu1 %v7212_v23  ;;  %3507 = vmatprep.mubr.f32.mxu1 %v7112_v34  ;;  %v7733_v34 = vld [vmem:[#allocation19_spill] sm:$0xff]  ;;  %v7304_v28 = vpack.c.bf16 %v7764_v21, %v7762_v58  ;;  %v7773_v31 = vand.u32 4294901760, %v7772_v49  ;;  %v7775_v58 = vld [vmem:[#allocation18_spill] sm:$0xff] }
 0x1e1   :  { %5428 = vmatpush3.bf16.msra.mxu0 %v6763_v61  ;;  %5390 = vmatprep.subr.bf16.mxu1 %v7220_v7  ;;  %v7734_v2 = vand.u32 4294901760, %v7733_v34  ;;  %v7753_v34 = vld [vmem:[#allocation34_spill] sm:$0xff]  ;;  %v7776_v21 = vld [vmem:[#allocation63_spill] sm:$0xff] }
 0x1e2   :  { %5430 = vmatprep.subr.bf16.mxu0 %v6739_v11  ;;  %v7784_v49 = vld [vmem:[#allocation46_spill] sm:$0xff] }
 0x1e3   :  { %v7245_v59 = vpack.c.bf16 %v7736_v9, %v7734_v2  ;;  %v7754_v2 = vand.u32 4294901760, %v7753_v34  ;;  %v7756_v9 = vand.u32 4294901760, %v7755_v17  ;;  %v7768_v34 = vand.u32 4294901760, %v7767_v57  ;;  %v7769_v17 = vld [vmem:[#allocation14_spill] sm:$0xff] }
 0x1e4   :  { %5392 = vmatpush3.bf16.msra.mxu1 %v7229_v40  ;;  %v3846_v57 = vand.u32 4294901760, %v3845_v39  ;;  %v7787_v39 = vld [vmem:[#allocation54_spill] sm:$0xff] }
 0x1e5   :  { %5432 = vmatpush3.bf16.msra.mxu0 %v6811_v33  ;;  %5394 = vmatprep.subr.bf16.mxu1 %v7237_v29  ;;  %v7285_v47 = vpack.c.bf16 %v7756_v9, %v7754_v2  ;;  %v7314_v2 = vpack.c.bf16 %v7768_v34, %v7766_v43  ;;  %v7770_v9 = vld [vmem:[#allocation49_spill] sm:$0xff]  ;;  %v7778_v43 = vld [vmem:[#allocation24_spill] sm:$0xff]  ;;  %v7779_v34 = vld [vmem:[#allocation27_spill] sm:$0xff] }
 0x1e6   :  { %5434 = vmatprep.subr.bf16.mxu0 %v7702_v26  ;;  %v7771_v18 = vand.u32 4294901760, %v7770_v9  ;;  %v7781_v9 = vld [vmem:[#allocation35_spill] sm:$0xff] }
 0x1e8   :  { %5396 = vmatpush3.bf16.msra.mxu1 %v7245_v59  ;;  %v7323_v52 = vpack.c.bf16 %v7773_v31, %v7771_v18  ;;  %v7782_v18 = vld [vmem:[#allocation38_spill] sm:$0xff]  ;;  %v7785_v31 = vld [vmem:[#allocation51_spill] sm:$0xff] }
 0x1e9   :  { %5436 = vmatpush3.bf16.msra.mxu0 %v7703_v42  ;;  %5398 = vmatprep.subr.bf16.mxu1 %v7253_v0 }
 0x1ea   :  { %5438 = vmatprep.subr.bf16.mxu0 %v7704_v55 }
 0x1ec   :  { %5400 = vmatpush3.bf16.msra.mxu1 %v7261_v24 }
 0x1ed   :  { %5440 = vmatpush3.bf16.msra.mxu0 %v7705_v15  ;;  %5402 = vmatprep.subr.bf16.mxu1 %v7269_v13 }
 0x1ee   :  { %5442 = vmatprep.subr.bf16.mxu0 %v7706_v44 }
 0x1f0   :  { %5404 = vmatpush3.bf16.msra.mxu1 %v7277_v12 }
 0x1f1   :  { %5444 = vmatpush3.bf16.msra.mxu0 %v6928_v25  ;;  %5406 = vmatprep.subr.bf16.mxu1 %v7285_v47 }
 0x1f2   :  { %5446 = vmatprep.subr.bf16.mxu0 %v6922_v53 }
 0x1f4   :  { %5408 = vmatpush3.bf16.msra.mxu1 %v7296_v37 }
 0x1f5   :  { %5448 = vmatpush3.bf16.msra.mxu0 %v7707_v3  ;;  %5410 = vmatprep.subr.bf16.mxu1 %v7304_v28 }
 0x1f6   :  { %5482 = vmatprep.subr.bf16.mxu0 %v7769_v17  ;;  %v7780_v17 = vld [vmem:[#allocation31_spill] sm:$0xff] }
 0x1f8   :  { %3613 = vmatmul.mubr.f32.vlgmr.msra.gmra.mrb[14].mxu0 %v7114_v30  ;;  %5412 = vmatpush3.bf16.msra.mxu1 %v7314_v2 }
 0x1f9   :  { %5484 = vmatpush3.bf16.msra.mxu0 %v7774_v51  ;;  %4083 = vmatprep.mubr.f32.mxu0 %v7289_v10  ;;  %v7352_v51 = vand.u32 4294901760, %v7170_v1 }
 0x1fa   :  { %5414 = vmatprep.subr.bf16.mxu1 %v7323_v52  ;;  %5486 = vmatprep.subr.bf16.mxu0 %v7775_v58  ;;  %v7786_v58 = vld [vmem:[#allocation53_spill] sm:$0xff] }
 0x1fc   :  { %5416 = vmatpush3.bf16.msra.mxu1 %v7776_v21 }
 0x1fd   :  { %5488 = vmatpush3.bf16.msra.mxu0 %v7777_v4  ;;  %5450 = vmatprep.subr.bf16.mxu1 %v7709_v56  ;;  %v3849_v4 = vsub.f32 %v7170_v1, %v7352_v51 }
 0x1fe   :  { %5490 = vmatprep.subr.bf16.mxu0 %v7778_v43  ;;  %v7788_v43 = vld [vmem:[#allocation56_spill] sm:$0xff] }
 0x1ff   :  { %3509 = vmatmul.mubr.f32.vlgmr.msra.gmra.mrb[14].mxu1 %v7114_v30  ;;  %v7783_v30 = vld [vmem:[#allocation42_spill] sm:$0xff] }
 0x200   :  { %5452 = vmatpush3.bf16.msra.mxu1 %v6662_v50  ;;  %3847 = vmatprep.mubr.f32.mxu1 %v3846_v57  ;;  %v7789_v57 = vld [vmem:[#allocation57_spill] sm:$0xff] }
 0x201   :  { %5492 = vmatpush3.bf16.msra.mxu0 %v7779_v34  ;;  %5454 = vmatprep.subr.bf16.mxu1 %v6639_v54  ;;  %v3850_v34 = vand.u32 4294901760, %v3849_v4 }
 0x202   :  { %5494 = vmatprep.subr.bf16.mxu0 %v7780_v17 }
 0x203   :  { %v3851_v17 = vsub.f32 %v3849_v4, %v3850_v34 }
 0x204   :  { %5456 = vmatpush3.bf16.msra.mxu1 %v6721_v63 }
 0x205   :  { %5496 = vmatpush3.bf16.msra.mxu0 %v7781_v9  ;;  %5458 = vmatprep.subr.bf16.mxu1 %v6681_v19  ;;  %v3852_v1 = vand.u32 4294901760, %v3851_v17  ;;  %v7790_v9 = vld [vmem:[#allocation58_spill] sm:$0xff] }
 0x206   :  { %5498 = vmatprep.subr.bf16.mxu0 %v7782_v18 }
 0x208   :  { %5460 = vmatpush3.bf16.msra.mxu1 %v6763_v61 }
 0x209   :  { %5500 = vmatpush3.bf16.msra.mxu0 %v7783_v30  ;;  %5462 = vmatprep.subr.bf16.mxu1 %v6739_v11 }
 0x20a   :  { %5502 = vmatprep.subr.bf16.mxu0 %v7784_v49 }
 0x20c   :  { %5464 = vmatpush3.bf16.msra.mxu1 %v6811_v33 }
 0x20d   :  { %5504 = vmatpush3.bf16.msra.mxu0 %v7785_v31  ;;  %5466 = vmatprep.subr.bf16.mxu1 %v7702_v26 }
 0x20e   :  { %5506 = vmatprep.subr.bf16.mxu0 %v7786_v58 }
 0x210   :  { %5468 = vmatpush3.bf16.msra.mxu1 %v7703_v42 }
 0x211   :  { %5508 = vmatpush3.bf16.msra.mxu0 %v7787_v39  ;;  %5470 = vmatprep.subr.bf16.mxu1 %v7704_v55 }
 0x212   :  { %5510 = vmatprep.subr.bf16.mxu0 %v7788_v43 }
 0x214   :  { %5472 = vmatpush3.bf16.msra.mxu1 %v7705_v15 }
 0x215   :  { %5512 = vmatpush3.bf16.msra.mxu0 %v7789_v57  ;;  %5474 = vmatprep.subr.bf16.mxu1 %v7706_v44 }
 0x216   :  { %5546 = vmatprep.subr.bf16.mxu0 %v7709_v56 }
 0x218   :  { %4085 = vmatmul.mubr.f32.vlgmr.msra.gmra.mrb[16].mxu0 %v7352_v51  ;;  %5476 = vmatpush3.bf16.msra.mxu1 %v6928_v25 }
 0x219   :  { %5548 = vmatpush3.bf16.msra.mxu0 %v6662_v50  ;;  %4327 = vmatprep.mubr.f32.mxu0 %v3844_v36 }
 0x21a   :  { %5478 = vmatprep.subr.bf16.mxu1 %v6922_v53  ;;  %5550 = vmatprep.subr.bf16.mxu0 %v6639_v54 }
 0x21c   :  { %5480 = vmatpush3.bf16.msra.mxu1 %v7707_v3 }
 0x21d   :  { %5552 = vmatpush3.bf16.msra.mxu0 %v6721_v63  ;;  %5514 = vmatprep.subr.bf16.mxu1 %v7790_v9 }
 0x21e   :  { %5554 = vmatprep.subr.bf16.mxu0 %v6681_v19 }
 0x21f   :  { %3853 = vmatmul.mubr.f32.vlgmr.msra.gmra.mrb[16].mxu1 %v3852_v1 }
 0x220   :  { %5516 = vmatpush3.bf16.msra.mxu1 %v6949_v62  ;;  %4220 = vmatprep.mubr.f32.mxu1 %v3843_v27 }
 0x221   :  { %5556 = vmatpush3.bf16.msra.mxu0 %v6763_v61  ;;  %5518 = vmatprep.subr.bf16.mxu1 %v6956_v5 }
 0x222   :  { %5558 = vmatprep.subr.bf16.mxu0 %v6739_v11 }
 0x224   :  { %5520 = vmatpush3.bf16.msra.mxu1 %v6960_v35 }
 0x225   :  { %5560 = vmatpush3.bf16.msra.mxu0 %v6811_v33  ;;  %5522 = vmatprep.subr.bf16.mxu1 %v6965_v20 }
 0x226   :  { %5562 = vmatprep.subr.bf16.mxu0 %v7702_v26 }
 0x228   :  { %5524 = vmatpush3.bf16.msra.mxu1 %v6970_v22 }
 0x229   :  { %5564 = vmatpush3.bf16.msra.mxu0 %v7703_v42  ;;  %5526 = vmatprep.subr.bf16.mxu1 %v6974_v38 }
 0x22a   :  { %5566 = vmatprep.subr.bf16.mxu0 %v7704_v55 }
 0x22c   :  { %5528 = vmatpush3.bf16.msra.mxu1 %v6978_v16 }
 0x22d   :  { %5568 = vmatpush3.bf16.msra.mxu0 %v7705_v15  ;;  %5530 = vmatprep.subr.bf16.mxu1 %v6982_v32 }
 0x22e   :  { %5570 = vmatprep.subr.bf16.mxu0 %v7706_v44 }
 0x230   :  { %5532 = vmatpush3.bf16.msra.mxu1 %v6986_v45 }
 0x231   :  { %5572 = vmatpush3.bf16.msra.mxu0 %v6928_v25  ;;  %5534 = vmatprep.subr.bf16.mxu1 %v6990_v6 }
 0x232   :  { %5574 = vmatprep.subr.bf16.mxu0 %v6922_v53 }
 0x234   :  { %5536 = vmatpush3.bf16.msra.mxu1 %v6994_v46 }
 0x235   :  { %5576 = vmatpush3.bf16.msra.mxu0 %v7707_v3  ;;  %5538 = vmatprep.subr.bf16.mxu1 %v7708_v14 }
 0x236   :  { %5610 = vmatprep.subr.bf16.mxu0 %v7709_v56 }
 0x238   :  { %4331 = vmatmul.mubr.f32.vlgmr.msra.gmra.mrb[18].mxu0 %v3850_v34  ;;  %5540 = vmatpush3.bf16.msra.mxu1 %v7710_v8 }
 0x239   :  { %5612 = vmatpush3.bf16.msra.mxu0 %v6662_v50  ;;  %4601 = vmatprep.mubr.f32.mxu0 %v7289_v10 }
 0x23a   :  { %5542 = vmatprep.subr.bf16.mxu1 %v7711_v60  ;;  %5614 = vmatprep.subr.bf16.mxu0 %v6639_v54 }
 0x23c   :  { %5544 = vmatpush3.bf16.msra.mxu1 %v7716_v41 }
 0x23d   :  { %5616 = vmatpush3.bf16.msra.mxu0 %v6721_v63  ;;  %5578 = vmatprep.subr.bf16.mxu1 %v7203_v48 }
 0x23e   :  { %5618 = vmatprep.subr.bf16.mxu0 %v6681_v19 }
 0x23f   :  { %4223 = vmatmul.mubr.f32.vlgmr.msra.gmra.mrb[18].mxu1 %v3849_v4 }
 0x240   :  { %5580 = vmatpush3.bf16.msra.mxu1 %v7212_v23  ;;  %4497 = vmatprep.mubr.f32.mxu1 %v7289_v10 }
 0x241   :  { %5620 = vmatpush3.bf16.msra.mxu0 %v6763_v61  ;;  %5582 = vmatprep.subr.bf16.mxu1 %v7220_v7 }
 0x242   :  { %5622 = vmatprep.subr.bf16.mxu0 %v6739_v11 }
 0x244   :  { %5584 = vmatpush3.bf16.msra.mxu1 %v7229_v40 }
 0x245   :  { %5624 = vmatpush3.bf16.msra.mxu0 %v6811_v33  ;;  %5586 = vmatprep.subr.bf16.mxu1 %v7237_v29 }
 0x246   :  { %5626 = vmatprep.subr.bf16.mxu0 %v7702_v26 }
 0x248   :  { %5588 = vmatpush3.bf16.msra.mxu1 %v7245_v59 }
 0x249   :  { %5628 = vmatpush3.bf16.msra.mxu0 %v7703_v42  ;;  %5590 = vmatprep.subr.bf16.mxu1 %v7253_v0 }
 0x24a   :  { %5630 = vmatprep.subr.bf16.mxu0 %v7704_v55 }
 0x24c   :  { %5592 = vmatpush3.bf16.msra.mxu1 %v7261_v24 }
 0x24d   :  { %5632 = vmatpush3.bf16.msra.mxu0 %v7705_v15  ;;  %5594 = vmatprep.subr.bf16.mxu1 %v7269_v13 }
 0x24e   :  { %5634 = vmatprep.subr.bf16.mxu0 %v7706_v44 }
 0x250   :  { %5596 = vmatpush3.bf16.msra.mxu1 %v7277_v12 }
 0x251   :  { %5636 = vmatpush3.bf16.msra.mxu0 %v6928_v25  ;;  %5598 = vmatprep.subr.bf16.mxu1 %v7285_v47 }
 0x252   :  { %5638 = vmatprep.subr.bf16.mxu0 %v6922_v53 }
 0x254   :  { %5600 = vmatpush3.bf16.msra.mxu1 %v7296_v37 }
 0x255   :  { %5640 = vmatpush3.bf16.msra.mxu0 %v7707_v3  ;;  %5602 = vmatprep.subr.bf16.mxu1 %v7304_v28 }
 0x258   :  { %4603 = vmatmul.mubr.f32.vlgmr.msra.gmra.mrb[20].mxu0 %v7352_v51  ;;  %5604 = vmatpush3.bf16.msra.mxu1 %v7314_v2 }
 0x259   :  { %5606 = vmatprep.subr.bf16.mxu1 %v7323_v52 }
 0x25c   :  { %5608 = vmatpush3.bf16.msra.mxu1 %v7776_v21 }
 0x25f   :  { %4499 = vmatmul.mubr.f32.vlgmr.msra.gmra.mrb[20].mxu1 %v7352_v51 }
 0x28a   :  { %v4688_v61 = vpop.f32.mrb[10].mxu0 }
 0x28b   :  { %v4689_v63 = vpop.f32.mrb[11].mxu0 }
 0x28c   :  { %v4690_v54 = vadd.f32 %v4689_v63, %v4688_v61 }
 0x292   :  { %v4653_v50 = vpop.f32.mrb[10].mxu1 }
 0x293   :  { %v4654_v19 = vpop.f32.mrb[11].mxu1 }
 0x294   :  { %v4655_v11 = vadd.f32 %v4654_v19, %v4653_v50 }
 0x296   :  { %v3097_v53 = vadd.f32 %v4690_v54, %v4655_v11 }
 0x2aa   :  { %v4758_v33 = vpop.f32.mrb[12].mxu0 }
 0x2ab   :  { %v4759_v25 = vpop.f32.mrb[13].mxu0 }
 0x2ac   :  { %v4760_v62 = vadd.f32 %v4759_v25, %v4758_v33 }
 0x2b2   :  { %v4723_v5 = vpop.f32.mrb[12].mxu1 }
 0x2b3   :  { %v4724_v35 = vpop.f32.mrb[13].mxu1 }
 0x2b4   :  { %v4725_v20 = vadd.f32 %v4724_v35, %v4723_v5 }
 0x2b6   :  { %v3235_v22 = vadd.f32 %v4725_v20, %v3097_v53 }
 0x2b8   :  { %v3343_v38 = vadd.f32 %v4760_v62, %v3235_v22 }
 0x2cb   :  { %v4828_v16 = vpop.f32.mrb[14].mxu0 }
 0x2cc   :  { %v4829_v32 = vpop.f32.mrb[15].mxu0 }
 0x2cd   :  { %v4830_v45 = vadd.f32 %v4829_v32, %v4828_v16 }
 0x2d2   :  { %v4793_v6 = vpop.f32.mrb[14].mxu1 }
 0x2d3   :  { %v4794_v46 = vpop.f32.mrb[15].mxu1 }
 0x2d4   :  { %v4795_v26 = vadd.f32 %v4794_v46, %v4793_v6 }
 0x2d6   :  { %v3511_v42 = vadd.f32 %v4795_v26, %v3343_v38 }
 0x2d8   :  { %v3615_v55 = vadd.f32 %v4830_v45, %v3511_v42 }
 0x2da   :  { %3619 = vst.msk [vmem:[%s7451_s7] sm:$0x7] %vm3618_vm6, %v3615_v55 }
 0x2eb   :  { %v4898_v15 = vpop.f32.mrb[16].mxu0 }
 0x2ec   :  { %v4899_v44 = vpop.f32.mrb[17].mxu0 }
 0x2ed   :  { %v4900_v3 = vadd.f32 %v4899_v44, %v4898_v15 }
 0x2f2   :  { %v4863_v14 = vpop.f32.mrb[16].mxu1 }
 0x2f3   :  { %v4864_v56 = vpop.f32.mrb[17].mxu1 }
 0x2f4   :  { %v4865_v8 = vadd.f32 %v4864_v56, %v4863_v14 }
 0x2f6   :  { %v4087_v60 = vadd.f32 %v4900_v3, %v4865_v8 }
 0x30b   :  { %v4968_v48 = vpop.f32.mrb[18].mxu0 }
 0x30c   :  { %v4969_v41 = vpop.f32.mrb[19].mxu0 }
 0x30d   :  { %v4970_v23 = vadd.f32 %v4969_v41, %v4968_v48 }
 0x312   :  { %v4933_v7 = vpop.f32.mrb[18].mxu1 }
 0x313   :  { %v4934_v40 = vpop.f32.mrb[19].mxu1 }
 0x314   :  { %v4935_v29 = vadd.f32 %v4934_v40, %v4933_v7 }
 0x316   :  { %v4225_v59 = vadd.f32 %v4935_v29, %v4087_v60 }
 0x318   :  { %v4333_v0 = vadd.f32 %v4970_v23, %v4225_v59 }
 0x32b   :  { %v5038_v24 = vpop.f32.mrb[20].mxu0 }
 0x32c   :  { %v5039_v13 = vpop.f32.mrb[21].mxu0 }
 0x32d   :  { %v5040_v12 = vadd.f32 %v5039_v13, %v5038_v24 }
 0x332   :  { %v5003_v47 = vpop.f32.mrb[20].mxu1 }
 0x333   :  { %v5004_v10 = vpop.f32.mrb[21].mxu1 }
 0x334   :  { %v5005_v37 = vadd.f32 %v5004_v10, %v5003_v47 }
 0x336   :  { %v4501_v28 = vadd.f32 %v5005_v37, %v4333_v0 }
 0x338   :  { %v4605_v27 = vadd.f32 %v5040_v12, %v4501_v28 }
 0x33a   :  { %4620 = vst.msk [vmem:[%s7451_s7 + $0x4] sm:$0x7] %vm3618_vm6, %v4605_v27 }
 0x33b   :  { %4618 = vsyncpa [#allocation3], 1 }

</bundles_post_ra>
